<compile_context>
chip_gen: v7x
topology: tpu7x:2x2x1
jax: 0.10.0
libtpu: 0.0.40
codegen_flags: <defaults>
</compile_context>

<pallas_src>
import functools

import jax
import jax.numpy as jnp
from jax.experimental import pallas as pl
from jax.experimental.pallas import tpu as pltpu

# ---------------- config constants ----------------
INPUT_DIM = 4            # USE_COORDS -> 4
NUM_FEAT = 32            # MODEL.NUM_INPUT_FEATURES
NUM_CLASSES = 12         # SEGMENTATION.NUM_CLASSES
NUM_LOGITS = NUM_CLASSES - 1
PADK = 128               # class axis padded to a full lane/sublane tile
NUM_PASSES = 4
EPS = 1e-5
NEG_BIG = -1e30          # finite "-inf" for padded logit rows


def _seg_kernel(feat_ref, label_ref, clsw_ref,
                w0_ref, b0_ref, wse_ref, bse_ref, wlin_ref, blin_ref,
                probs_ref, feat_out_ref, loss_ref,
                stats_ref, *, n_actual, tile_n):
    p = pl.program_id(0)          # statistics pass
    t = pl.program_id(1)          # point tile

    # ---- init persistent accumulators ----
    @pl.when(jnp.logical_and(p == 0, t == 0))
    def _():
        stats_ref[...] = jnp.zeros_like(stats_ref)

    @pl.when(jnp.logical_and(p == NUM_PASSES - 1, t == 0))
    def _():
        loss_ref[...] = jnp.zeros_like(loss_ref)

    x = feat_ref[...]                                           # (IN, TN) f32

    # lane-validity mask for zero-padded tail points
    col = jax.lax.broadcasted_iota(jnp.int32, (1, tile_n), 1) + t * tile_n
    colmask = (col < n_actual).astype(jnp.float32)              # (1, TN)
    inv_n = 1.0 / float(n_actual)

    def stats_accum(h, c):
        # fused per-channel sum / sum-of-squares (lane reduce), padded points masked
        stats_ref[:, c:c + 1] += jnp.sum(h * colmask, axis=1, keepdims=True)
        stats_ref[:, c + 1:c + 2] += jnp.sum(h * h * colmask, axis=1, keepdims=True)

    def norm_apply(h, c):
        mean = stats_ref[:, c:c + 1] * inv_n
        ex2 = stats_ref[:, c + 1:c + 2] * inv_n
        var = jnp.maximum(ex2 - mean * mean, 0.0)
        return (h - mean) * jax.lax.rsqrt(var + EPS)

    # ---- sparse_model (kernel-center pointwise conv-in, see TODO above) ----
    h0 = jnp.dot(w0_ref[...], x.astype(jnp.bfloat16),
                 preferred_element_type=jnp.float32) + b0_ref[...]   # (C, TN)

    @pl.when(p == 0)
    def _():
        stats_accum(h0, 0)

    h1 = jnp.maximum(norm_apply(h0, 0), 0.0)                    # InstanceNorm + ReLU

    @pl.when(p == 1)
    def _():
        stats_accum(h1, 2)

    # MinkUNet14E body -> identity (TODO above)
    h2 = jnp.maximum(norm_apply(h1, 2), 0.0)                    # InstanceNorm + ReLU

    # ---- shape_embedding: Conv1d(k=1) == matmul, InstanceNorm1d, LeakyReLU(0.2) ----
    se_pre = jnp.dot(wse_ref[...], h2.astype(jnp.bfloat16),
                     preferred_element_type=jnp.float32) + bse_ref[...]

    @pl.when(p == 2)
    def _():
        stats_accum(se_pre, 4)

    se = norm_apply(se_pre, 4)
    se = jnp.where(se >= 0.0, se, 0.2 * se)                     # LeakyReLU(0.2)
    feat_out_ref[...] = se

    # ---- residual + linear classifier (class axis padded to 128) ----
    xr = se + h2
    logits = jnp.dot(wlin_ref[...], xr.astype(jnp.bfloat16),
                     preferred_element_type=jnp.float32) + blin_ref[...]  # (PADK, TN)

    m = jnp.max(logits, axis=0, keepdims=True)
    lse = jnp.log(jnp.sum(jnp.exp(logits - m), axis=0, keepdims=True)) + m
    logp = logits - lse
    probs_ref[...] = jnp.exp(logp)                              # SOFTMAX output

    # ---- weighted cross-entropy (ignore_index=-100), accumulated as num/den ----
    @pl.when(p == NUM_PASSES - 1)
    def _():
        lab = label_ref[...]                                    # (1, TN) int32
        klass = jax.lax.broadcasted_iota(jnp.int32, (PADK, tile_n), 0)
        onehot = (klass == lab).astype(jnp.float32)             # ignore/pad never match
        valid = jnp.logical_and(lab != -100, col < n_actual).astype(jnp.float32)
        nll = -jnp.sum(onehot * logp, axis=0, keepdims=True)    # (1, TN)
        w_per = jnp.sum(onehot * clsw_ref[...], axis=0, keepdims=True)
        loss_ref[0:1, 0:1] += jnp.sum(nll * w_per * valid, axis=1, keepdims=True)
        loss_ref[0:1, 1:2] += jnp.sum(w_per * valid, axis=1, keepdims=True)


def sparse_seg_net_forward(coords, feat, label, weights, params, *, tile_n=256):
    """coords is accepted for API parity but only defines sparse structure
    (elided here — see TODOs above). Returns (probs, feat_embedding, loss)."""
    del coords
    f32 = jnp.float32
    bf16 = jnp.bfloat16
    n = feat.shape[0]
    n_pad = max(tile_n, ((n + tile_n - 1) // tile_n) * tile_n)
    num_tiles = n_pad // tile_n

    # channel-major, lane-padded inputs
    feat_cm = jnp.zeros((INPUT_DIM, n_pad), f32).at[:, :n].set(feat.astype(f32).T)
    label_cm = jnp.full((1, n_pad), -100, jnp.int32).at[0, :n].set(label.astype(jnp.int32))
    clsw = jnp.zeros((PADK, 1), f32).at[:NUM_LOGITS, 0].set(weights.astype(f32))

    # transposed / class-padded parameters (bf16 for the MXU, f32 biases)
    w0t = params["w0"].T.astype(bf16)                                   # (C, IN)
    b0t = params["b0"].reshape(NUM_FEAT, 1).astype(f32)
    wset = params["wse"].T.astype(bf16)                                 # (C, C)
    bset = params["bse"].reshape(NUM_FEAT, 1).astype(f32)
    wlint = (jnp.zeros((PADK, NUM_FEAT), f32)
             .at[:NUM_LOGITS].set(params["wlin"].T.astype(f32))).astype(bf16)
    blint = (jnp.full((PADK, 1), NEG_BIG, f32)
             .at[:NUM_LOGITS].set(params["blin"].reshape(NUM_LOGITS, 1).astype(f32)))

    kernel = functools.partial(_seg_kernel, n_actual=n, tile_n=tile_n)

    out_shapes = (
        jax.ShapeDtypeStruct((PADK, n_pad), f32),      # softmax probs (padded classes)
        jax.ShapeDtypeStruct((NUM_FEAT, n_pad), f32),  # shape-embedding features
        jax.ShapeDtypeStruct((1, 2), f32),             # [loss numerator, denominator]
    )
    in_specs = [
        pl.BlockSpec((INPUT_DIM, tile_n), lambda p, t: (0, t)),
        pl.BlockSpec((1, tile_n), lambda p, t: (0, t)),
        pl.BlockSpec((PADK, 1), lambda p, t: (0, 0)),
        pl.BlockSpec((NUM_FEAT, INPUT_DIM), lambda p, t: (0, 0)),
        pl.BlockSpec((NUM_FEAT, 1), lambda p, t: (0, 0)),
        pl.BlockSpec((NUM_FEAT, NUM_FEAT), lambda p, t: (0, 0)),
        pl.BlockSpec((NUM_FEAT, 1), lambda p, t: (0, 0)),
        pl.BlockSpec((PADK, NUM_FEAT), lambda p, t: (0, 0)),
        pl.BlockSpec((PADK, 1), lambda p, t: (0, 0)),
    ]
    out_specs = (
        pl.BlockSpec((PADK, tile_n), lambda p, t: (0, t)),
        pl.BlockSpec((NUM_FEAT, tile_n), lambda p, t: (0, t)),
        pl.BlockSpec((1, 2), lambda p, t: (0, 0)),
    )

    probs_cm, feat_cm_out, loss_nd = pl.pallas_call(
        kernel,
        out_shape=out_shapes,
        grid=(NUM_PASSES, num_tiles),
        in_specs=in_specs,
        out_specs=out_specs,
        scratch_shapes=[pltpu.VMEM((NUM_FEAT, 8), jnp.float32)],  # 3x (sum, sumsq)
        compiler_params=pltpu.CompilerParams(
            # Chained global-norm stats + carried loss accumulator => both axes
            # must stay sequential ("arbitrary"); dual-TC use would need a
            # cross-core stats reduction split across kernels.
            dimension_semantics=("arbitrary", "arbitrary"),
            # Explicit cap well under v7x's 64 MiB and above v5e's 16 MiB default.
            vmem_limit_bytes=32 * 1024 * 1024,
        ),
    )(feat_cm, label_cm, clsw, w0t, b0t, wset, bset, wlint, blint)

    probs = probs_cm[:NUM_LOGITS, :n].T
    feat_emb = feat_cm_out[:, :n].T
    # guard: if every label is ignore_index the denominator is 0 -> loss 0, not NaN
    loss = loss_nd[0, 0] / jnp.maximum(loss_nd[0, 1], jnp.float32(1e-12))
    return probs, feat_emb, loss


def init_params(key):
    k0, k1, k2, k3, k4, k5 = jax.random.split(key, 6)
    s = 0.1
    return {
        "w0": s * jax.random.normal(k0, (INPUT_DIM, NUM_FEAT), jnp.float32),
        "b0": s * jax.random.normal(k1, (1, NUM_FEAT), jnp.float32),
        "wse": s * jax.random.normal(k2, (NUM_FEAT, NUM_FEAT), jnp.float32),
        "bse": s * jax.random.normal(k3, (1, NUM_FEAT), jnp.float32),
        "wlin": s * jax.random.normal(k4, (NUM_FEAT, NUM_LOGITS), jnp.float32),
        "blin": s * jax.random.normal(k5, (1, NUM_LOGITS), jnp.float32),
    }


if __name__ == "__main__":
    key = jax.random.PRNGKey(0)
    kp, kc, kf, kl = jax.random.split(key, 4)

    N = 300  # number of sparse points (not a tile multiple -> exercises masking)
    params = init_params(kp)
    # coords: (N, 4) = (batch_idx, x, y, z) as in MinkowskiEngine batched coords
    coords = jnp.concatenate(
        [jnp.zeros((N, 1), jnp.int32),
         jax.random.randint(kc, (N, 3), 0, 16, jnp.int32)], axis=1)
    feat = jax.random.normal(kf, (N, INPUT_DIM), jnp.float32)
    label = jax.random.randint(kl, (N,), 0, NUM_LOGITS, jnp.int32)
    label = label.at[0].set(-100)  # exercise ignore_index
    weights = jnp.linspace(0.5, 1.5, NUM_LOGITS).astype(jnp.float32)

    probs, feat_emb, loss = sparse_seg_net_forward(coords, feat, label, weights, params)
    jax.block_until_ready((probs, feat_emb, loss))

    assert probs.shape == (N, NUM_LOGITS)
    assert feat_emb.shape == (N, NUM_FEAT)
    assert bool(jnp.all(jnp.isfinite(probs)))
    assert bool(jnp.all(jnp.isfinite(feat_emb)))
    assert bool(jnp.isfinite(loss))
    row_sums = jnp.sum(probs, axis=-1)
    assert bool(jnp.all(jnp.abs(row_sums - 1.0) < 1e-3))
    print("KERNEL_OK")
</pallas_src>

<mosaic_0001>
module attributes {stable_mosaic.version = 11 : i64} {
  func.func @_seg_kernel(%arg0: i32, %arg1: i32, %arg2: memref<4x256xf32, #tpu.memory_space<vmem>>, %arg3: memref<1x256xi32, #tpu.memory_space<vmem>>, %arg4: memref<128x1xf32, #tpu.memory_space<vmem>>, %arg5: memref<32x4xbf16, #tpu.memory_space<vmem>>, %arg6: memref<32x1xf32, #tpu.memory_space<vmem>>, %arg7: memref<32x32xbf16, #tpu.memory_space<vmem>>, %arg8: memref<32x1xf32, #tpu.memory_space<vmem>>, %arg9: memref<128x32xbf16, #tpu.memory_space<vmem>>, %arg10: memref<128x1xf32, #tpu.memory_space<vmem>>, %arg11: memref<128x256xf32, #tpu.memory_space<vmem>>, %arg12: memref<32x256xf32, #tpu.memory_space<vmem>>, %arg13: memref<1x2xf32, #tpu.memory_space<vmem>>, %arg14: memref<32x8xf32, #tpu.memory_space<vmem>>) attributes {dimension_semantics = [#tpu.dimension_semantics<arbitrary>, #tpu.dimension_semantics<arbitrary>], iteration_bounds = array<i64: 4, 2>, scalar_prefetch = 0 : i64, scratch_operands = 1 : i64, tpu.core_type = #tpu.core_type<tc>, window_params = [{transform_indices = @transform_0, window_bounds = array<i64: 4, 256>}, {transform_indices = @transform_1, window_bounds = array<i64: 1, 256>}, {pipeline_mode = #tpu.pipeline_mode<synchronous>, transform_indices = @transform_2, window_bounds = array<i64: 128, 1>}, {pipeline_mode = #tpu.pipeline_mode<synchronous>, transform_indices = @transform_3, window_bounds = array<i64: 32, 4>}, {pipeline_mode = #tpu.pipeline_mode<synchronous>, transform_indices = @transform_4, window_bounds = array<i64: 32, 1>}, {pipeline_mode = #tpu.pipeline_mode<synchronous>, transform_indices = @transform_5, window_bounds = array<i64: 32, 32>}, {pipeline_mode = #tpu.pipeline_mode<synchronous>, transform_indices = @transform_6, window_bounds = array<i64: 32, 1>}, {pipeline_mode = #tpu.pipeline_mode<synchronous>, transform_indices = @transform_7, window_bounds = array<i64: 128, 32>}, {pipeline_mode = #tpu.pipeline_mode<synchronous>, transform_indices = @transform_8, window_bounds = array<i64: 128, 1>}, {transform_indices = @transform_9, window_bounds = array<i64: 128, 256>}, {transform_indices = @transform_10, window_bounds = array<i64: 32, 256>}, {pipeline_mode = #tpu.pipeline_mode<synchronous>, transform_indices = @transform_11, window_bounds = array<i64: 1, 2>}]} {
    %c0_i32 = arith.constant 0 : i32
    %0 = arith.cmpi eq, %arg0, %c0_i32 : i32
    %c0_i32_0 = arith.constant 0 : i32
    %1 = arith.cmpi eq, %arg1, %c0_i32_0 : i32
    %2 = arith.andi %0, %1 : i1
    %3 = arith.extui %2 : i1 to i32
    %c0_i32_1 = arith.constant 0 : i32
    %4 = arith.cmpi ne, %3, %c0_i32_1 : i32
    scf.if %4 {
      %cst_54 = arith.constant 0.000000e+00 : f32
      %124 = vector.broadcast %cst_54 : f32 to vector<32x8xf32>
      %c0_55 = arith.constant 0 : index
      %c0_56 = arith.constant 0 : index
      %125 = vector.load %arg14[%c0_55, %c0_56] : memref<32x8xf32, #tpu.memory_space<vmem>>, vector<32x8xf32>
      tpu.vector_store %arg14[%c0_55, %c0_56], %124 {strides = array<i32>} : memref<32x8xf32, #tpu.memory_space<vmem>>, vector<32x8xf32>,
    } else {
    }
    %c3_i32 = arith.constant 3 : i32
    %5 = arith.cmpi eq, %arg0, %c3_i32 : i32
    %c0_i32_2 = arith.constant 0 : i32
    %6 = arith.cmpi eq, %arg1, %c0_i32_2 : i32
    %7 = arith.andi %5, %6 : i1
    %8 = arith.extui %7 : i1 to i32
    %c0_i32_3 = arith.constant 0 : i32
    %9 = arith.cmpi ne, %8, %c0_i32_3 : i32
    scf.if %9 {
      %cst_54 = arith.constant 0.000000e+00 : f32
      %124 = vector.broadcast %cst_54 : f32 to vector<1x2xf32>
      %c0_55 = arith.constant 0 : index
      %c0_56 = arith.constant 0 : index
      %125 = vector.load %arg13[%c0_55, %c0_56] : memref<1x2xf32, #tpu.memory_space<vmem>>, vector<1x2xf32>
      tpu.vector_store %arg13[%c0_55, %c0_56], %124 {strides = array<i32>} : memref<1x2xf32, #tpu.memory_space<vmem>>, vector<1x2xf32>,
    } else {
    }
    %c0 = arith.constant 0 : index
    %c0_4 = arith.constant 0 : index
    %10 = vector.load %arg2[%c0, %c0_4] : memref<4x256xf32, #tpu.memory_space<vmem>>, vector<4x256xf32>
    %11 = tpu.iota {dimensions = array<i32: 1>} : vector<1x256xi32>
    %c256_i32 = arith.constant 256 : i32
    %12 = arith.muli %arg1, %c256_i32 : i32
    %13 = vector.broadcast %12 : i32 to vector<1x256xi32>
    %14 = arith.addi %11, %13 : vector<1x256xi32>
    %c300_i32 = arith.constant 300 : i32
    %15 = vector.broadcast %c300_i32 : i32 to vector<1x256xi32>
    %16 = arith.cmpi slt, %14, %15 : vector<1x256xi32>
    %17 = arith.extui %16 : vector<1x256xi1> to vector<1x256xi32>
    %18 = arith.sitofp %17 : vector<1x256xi32> to vector<1x256xf32>
    %c0_5 = arith.constant 0 : index
    %c0_6 = arith.constant 0 : index
    %19 = vector.load %arg5[%c0_5, %c0_6] : memref<32x4xbf16, #tpu.memory_space<vmem>>, vector<32x4xbf16>
    %20 = arith.truncf %10 : vector<4x256xf32> to vector<4x256xbf16>
    %cst = arith.constant dense<0.000000e+00> : vector<32x256xf32>
    %21 = tpu.matmul %19, %20, %cst {dimension_numbers = #tpu.dot_dimension_numbers<[1], [0], [0], [1], [0, 0, 1, 1], [], []>} : vector<32x4xbf16>, vector<4x256xbf16>, vector<32x256xf32> -> vector<32x256xf32>
    %c0_7 = arith.constant 0 : index
    %c0_8 = arith.constant 0 : index
    %22 = vector.load %arg6[%c0_7, %c0_8] : memref<32x1xf32, #tpu.memory_space<vmem>>, vector<32x1xf32>
    %23 = vector.broadcast %22 : vector<32x1xf32> to vector<32x256xf32>
    %24 = arith.addf %21, %23 : vector<32x256xf32>
    %c0_i32_9 = arith.constant 0 : i32
    %25 = arith.cmpi eq, %arg0, %c0_i32_9 : i32
    %26 = arith.extui %25 : i1 to i32
    %c0_i32_10 = arith.constant 0 : i32
    %27 = arith.cmpi ne, %26, %c0_i32_10 : i32
    scf.if %27 {
      %c0_54 = arith.constant 0 : index
      %c0_55 = arith.constant 0 : index
      %124 = vector.load %arg14[%c0_54, %c0_55] : memref<32x8xf32, #tpu.memory_space<vmem>>, vector<32x1xf32>
      %125 = vector.broadcast %18 : vector<1x256xf32> to vector<32x256xf32>
      %126 = arith.mulf %24, %125 : vector<32x256xf32>
      %cst_56 = arith.constant dense<0.000000e+00> : vector<32xf32>
      %127 = vector.multi_reduction <add>, %126, %cst_56 [1] : vector<32x256xf32> to vector<32xf32>
      %128 = vector.shape_cast %127 : vector<32xf32> to vector<32x1xf32>
      %129 = arith.addf %124, %128 : vector<32x1xf32>
      %c0_57 = arith.constant 0 : index
      %c0_58 = arith.constant 0 : index
      %130 = vector.load %arg14[%c0_57, %c0_58] : memref<32x8xf32, #tpu.memory_space<vmem>>, vector<32x1xf32>
      tpu.vector_store %arg14[%c0_57, %c0_58], %129 {strides = array<i32>} : memref<32x8xf32, #tpu.memory_space<vmem>>, vector<32x1xf32>,
      %c0_59 = arith.constant 0 : index
      %c1_60 = arith.constant 1 : index
      %131 = vector.load %arg14[%c0_59, %c1_60] : memref<32x8xf32, #tpu.memory_space<vmem>>, vector<32x1xf32>
      %132 = arith.mulf %24, %24 : vector<32x256xf32>
      %133 = vector.broadcast %18 : vector<1x256xf32> to vector<32x256xf32>
      %134 = arith.mulf %132, %133 : vector<32x256xf32>
      %cst_61 = arith.constant dense<0.000000e+00> : vector<32xf32>
      %135 = vector.multi_reduction <add>, %134, %cst_61 [1] : vector<32x256xf32> to vector<32xf32>
      %136 = vector.shape_cast %135 : vector<32xf32> to vector<32x1xf32>
      %137 = arith.addf %131, %136 : vector<32x1xf32>
      %c0_62 = arith.constant 0 : index
      %c1_63 = arith.constant 1 : index
      %138 = vector.load %arg14[%c0_62, %c1_63] : memref<32x8xf32, #tpu.memory_space<vmem>>, vector<32x1xf32>
      tpu.vector_store %arg14[%c0_62, %c1_63], %137 {strides = array<i32>} : memref<32x8xf32, #tpu.memory_space<vmem>>, vector<32x1xf32>,
    } else {
    }
    %c0_11 = arith.constant 0 : index
    %c0_12 = arith.constant 0 : index
    %28 = vector.load %arg14[%c0_11, %c0_12] : memref<32x8xf32, #tpu.memory_space<vmem>>, vector<32x1xf32>
    %cst_13 = arith.constant 0.00333333341 : f32
    %29 = vector.broadcast %cst_13 : f32 to vector<32x1xf32>
    %30 = arith.mulf %28, %29 : vector<32x1xf32>
    %c0_14 = arith.constant 0 : index
    %c1 = arith.constant 1 : index
    %31 = vector.load %arg14[%c0_14, %c1] : memref<32x8xf32, #tpu.memory_space<vmem>>, vector<32x1xf32>
    %cst_15 = arith.constant 0.00333333341 : f32
    %32 = vector.broadcast %cst_15 : f32 to vector<32x1xf32>
    %33 = arith.mulf %31, %32 : vector<32x1xf32>
    %34 = arith.mulf %30, %30 : vector<32x1xf32>
    %35 = arith.subf %33, %34 : vector<32x1xf32>
    %cst_16 = arith.constant 0.000000e+00 : f32
    %36 = vector.broadcast %cst_16 : f32 to vector<32x1xf32>
    %37 = arith.maximumf %35, %36 : vector<32x1xf32>
    %38 = vector.broadcast %30 : vector<32x1xf32> to vector<32x256xf32>
    %39 = arith.subf %24, %38 : vector<32x256xf32>
    %cst_17 = arith.constant 9.99999974E-6 : f32
    %40 = vector.broadcast %cst_17 : f32 to vector<32x1xf32>
    %41 = arith.addf %37, %40 : vector<32x1xf32>
    %42 = math.rsqrt %41 : vector<32x1xf32>
    %43 = vector.broadcast %42 : vector<32x1xf32> to vector<32x256xf32>
    %44 = arith.mulf %39, %43 : vector<32x256xf32>
    %cst_18 = arith.constant 0.000000e+00 : f32
    %45 = vector.broadcast %cst_18 : f32 to vector<32x256xf32>
    %46 = arith.maximumf %44, %45 : vector<32x256xf32>
    %c1_i32 = arith.constant 1 : i32
    %47 = arith.cmpi eq, %arg0, %c1_i32 : i32
    %48 = arith.extui %47 : i1 to i32
    %c0_i32_19 = arith.constant 0 : i32
    %49 = arith.cmpi ne, %48, %c0_i32_19 : i32
    scf.if %49 {
      %c0_54 = arith.constant 0 : index
      %c2_55 = arith.constant 2 : index
      %124 = vector.load %arg14[%c0_54, %c2_55] : memref<32x8xf32, #tpu.memory_space<vmem>>, vector<32x1xf32>
      %125 = vector.broadcast %18 : vector<1x256xf32> to vector<32x256xf32>
      %126 = arith.mulf %46, %125 : vector<32x256xf32>
      %cst_56 = arith.constant dense<0.000000e+00> : vector<32xf32>
      %127 = vector.multi_reduction <add>, %126, %cst_56 [1] : vector<32x256xf32> to vector<32xf32>
      %128 = vector.shape_cast %127 : vector<32xf32> to vector<32x1xf32>
      %129 = arith.addf %124, %128 : vector<32x1xf32>
      %c0_57 = arith.constant 0 : index
      %c2_58 = arith.constant 2 : index
      %130 = vector.load %arg14[%c0_57, %c2_58] : memref<32x8xf32, #tpu.memory_space<vmem>>, vector<32x1xf32>
      tpu.vector_store %arg14[%c0_57, %c2_58], %129 {strides = array<i32>} : memref<32x8xf32, #tpu.memory_space<vmem>>, vector<32x1xf32>,
      %c0_59 = arith.constant 0 : index
      %c3_60 = arith.constant 3 : index
      %131 = vector.load %arg14[%c0_59, %c3_60] : memref<32x8xf32, #tpu.memory_space<vmem>>, vector<32x1xf32>
      %132 = arith.mulf %46, %46 : vector<32x256xf32>
      %133 = vector.broadcast %18 : vector<1x256xf32> to vector<32x256xf32>
      %134 = arith.mulf %132, %133 : vector<32x256xf32>
      %cst_61 = arith.constant dense<0.000000e+00> : vector<32xf32>
      %135 = vector.multi_reduction <add>, %134, %cst_61 [1] : vector<32x256xf32> to vector<32xf32>
      %136 = vector.shape_cast %135 : vector<32xf32> to vector<32x1xf32>
      %137 = arith.addf %131, %136 : vector<32x1xf32>
      %c0_62 = arith.constant 0 : index
      %c3_63 = arith.constant 3 : index
      %138 = vector.load %arg14[%c0_62, %c3_63] : memref<32x8xf32, #tpu.memory_space<vmem>>, vector<32x1xf32>
      tpu.vector_store %arg14[%c0_62, %c3_63], %137 {strides = array<i32>} : memref<32x8xf32, #tpu.memory_space<vmem>>, vector<32x1xf32>,
    } else {
    }
    %c0_20 = arith.constant 0 : index
    %c2 = arith.constant 2 : index
    %50 = vector.load %arg14[%c0_20, %c2] : memref<32x8xf32, #tpu.memory_space<vmem>>, vector<32x1xf32>
    %cst_21 = arith.constant 0.00333333341 : f32
    %51 = vector.broadcast %cst_21 : f32 to vector<32x1xf32>
    %52 = arith.mulf %50, %51 : vector<32x1xf32>
    %c0_22 = arith.constant 0 : index
    %c3 = arith.constant 3 : index
    %53 = vector.load %arg14[%c0_22, %c3] : memref<32x8xf32, #tpu.memory_space<vmem>>, vector<32x1xf32>
    %cst_23 = arith.constant 0.00333333341 : f32
    %54 = vector.broadcast %cst_23 : f32 to vector<32x1xf32>
    %55 = arith.mulf %53, %54 : vector<32x1xf32>
    %56 = arith.mulf %52, %52 : vector<32x1xf32>
    %57 = arith.subf %55, %56 : vector<32x1xf32>
    %cst_24 = arith.constant 0.000000e+00 : f32
    %58 = vector.broadcast %cst_24 : f32 to vector<32x1xf32>
    %59 = arith.maximumf %57, %58 : vector<32x1xf32>
    %60 = vector.broadcast %52 : vector<32x1xf32> to vector<32x256xf32>
    %61 = arith.subf %46, %60 : vector<32x256xf32>
    %cst_25 = arith.constant 9.99999974E-6 : f32
    %62 = vector.broadcast %cst_25 : f32 to vector<32x1xf32>
    %63 = arith.addf %59, %62 : vector<32x1xf32>
    %64 = math.rsqrt %63 : vector<32x1xf32>
    %65 = vector.broadcast %64 : vector<32x1xf32> to vector<32x256xf32>
    %66 = arith.mulf %61, %65 : vector<32x256xf32>
    %cst_26 = arith.constant 0.000000e+00 : f32
    %67 = vector.broadcast %cst_26 : f32 to vector<32x256xf32>
    %68 = arith.maximumf %66, %67 : vector<32x256xf32>
    %c0_27 = arith.constant 0 : index
    %c0_28 = arith.constant 0 : index
    %69 = vector.load %arg7[%c0_27, %c0_28] : memref<32x32xbf16, #tpu.memory_space<vmem>>, vector<32x32xbf16>
    %70 = arith.truncf %68 : vector<32x256xf32> to vector<32x256xbf16>
    %cst_29 = arith.constant dense<0.000000e+00> : vector<32x256xf32>
    %71 = tpu.matmul %69, %70, %cst_29 {dimension_numbers = #tpu.dot_dimension_numbers<[1], [0], [0], [1], [0, 0, 1, 1], [], []>} : vector<32x32xbf16>, vector<32x256xbf16>, vector<32x256xf32> -> vector<32x256xf32>
    %c0_30 = arith.constant 0 : index
    %c0_31 = arith.constant 0 : index
    %72 = vector.load %arg8[%c0_30, %c0_31] : memref<32x1xf32, #tpu.memory_space<vmem>>, vector<32x1xf32>
    %73 = vector.broadcast %72 : vector<32x1xf32> to vector<32x256xf32>
    %74 = arith.addf %71, %73 : vector<32x256xf32>
    %c2_i32 = arith.constant 2 : i32
    %75 = arith.cmpi eq, %arg0, %c2_i32 : i32
    %76 = arith.extui %75 : i1 to i32
    %c0_i32_32 = arith.constant 0 : i32
    %77 = arith.cmpi ne, %76, %c0_i32_32 : i32
    scf.if %77 {
      %c0_54 = arith.constant 0 : index
      %c4_55 = arith.constant 4 : index
      %124 = vector.load %arg14[%c0_54, %c4_55] : memref<32x8xf32, #tpu.memory_space<vmem>>, vector<32x1xf32>
      %125 = vector.broadcast %18 : vector<1x256xf32> to vector<32x256xf32>
      %126 = arith.mulf %74, %125 : vector<32x256xf32>
      %cst_56 = arith.constant dense<0.000000e+00> : vector<32xf32>
      %127 = vector.multi_reduction <add>, %126, %cst_56 [1] : vector<32x256xf32> to vector<32xf32>
      %128 = vector.shape_cast %127 : vector<32xf32> to vector<32x1xf32>
      %129 = arith.addf %124, %128 : vector<32x1xf32>
      %c0_57 = arith.constant 0 : index
      %c4_58 = arith.constant 4 : index
      %130 = vector.load %arg14[%c0_57, %c4_58] : memref<32x8xf32, #tpu.memory_space<vmem>>, vector<32x1xf32>
      tpu.vector_store %arg14[%c0_57, %c4_58], %129 {strides = array<i32>} : memref<32x8xf32, #tpu.memory_space<vmem>>, vector<32x1xf32>,
      %c0_59 = arith.constant 0 : index
      %c5_60 = arith.constant 5 : index
      %131 = vector.load %arg14[%c0_59, %c5_60] : memref<32x8xf32, #tpu.memory_space<vmem>>, vector<32x1xf32>
      %132 = arith.mulf %74, %74 : vector<32x256xf32>
      %133 = vector.broadcast %18 : vector<1x256xf32> to vector<32x256xf32>
      %134 = arith.mulf %132, %133 : vector<32x256xf32>
      %cst_61 = arith.constant dense<0.000000e+00> : vector<32xf32>
      %135 = vector.multi_reduction <add>, %134, %cst_61 [1] : vector<32x256xf32> to vector<32xf32>
      %136 = vector.shape_cast %135 : vector<32xf32> to vector<32x1xf32>
      %137 = arith.addf %131, %136 : vector<32x1xf32>
      %c0_62 = arith.constant 0 : index
      %c5_63 = arith.constant 5 : index
      %138 = vector.load %arg14[%c0_62, %c5_63] : memref<32x8xf32, #tpu.memory_space<vmem>>, vector<32x1xf32>
      tpu.vector_store %arg14[%c0_62, %c5_63], %137 {strides = array<i32>} : memref<32x8xf32, #tpu.memory_space<vmem>>, vector<32x1xf32>,
    } else {
    }
    %c0_33 = arith.constant 0 : index
    %c4 = arith.constant 4 : index
    %78 = vector.load %arg14[%c0_33, %c4] : memref<32x8xf32, #tpu.memory_space<vmem>>, vector<32x1xf32>
    %cst_34 = arith.constant 0.00333333341 : f32
    %79 = vector.broadcast %cst_34 : f32 to vector<32x1xf32>
    %80 = arith.mulf %78, %79 : vector<32x1xf32>
    %c0_35 = arith.constant 0 : index
    %c5 = arith.constant 5 : index
    %81 = vector.load %arg14[%c0_35, %c5] : memref<32x8xf32, #tpu.memory_space<vmem>>, vector<32x1xf32>
    %cst_36 = arith.constant 0.00333333341 : f32
    %82 = vector.broadcast %cst_36 : f32 to vector<32x1xf32>
    %83 = arith.mulf %81, %82 : vector<32x1xf32>
    %84 = arith.mulf %80, %80 : vector<32x1xf32>
    %85 = arith.subf %83, %84 : vector<32x1xf32>
    %cst_37 = arith.constant 0.000000e+00 : f32
    %86 = vector.broadcast %cst_37 : f32 to vector<32x1xf32>
    %87 = arith.maximumf %85, %86 : vector<32x1xf32>
    %88 = vector.broadcast %80 : vector<32x1xf32> to vector<32x256xf32>
    %89 = arith.subf %74, %88 : vector<32x256xf32>
    %cst_38 = arith.constant 9.99999974E-6 : f32
    %90 = vector.broadcast %cst_38 : f32 to vector<32x1xf32>
    %91 = arith.addf %87, %90 : vector<32x1xf32>
    %92 = math.rsqrt %91 : vector<32x1xf32>
    %93 = vector.broadcast %92 : vector<32x1xf32> to vector<32x256xf32>
    %94 = arith.mulf %89, %93 : vector<32x256xf32>
    %cst_39 = arith.constant 0.000000e+00 : f32
    %95 = vector.broadcast %cst_39 : f32 to vector<32x256xf32>
    %96 = arith.cmpf oge, %94, %95 : vector<32x256xf32>
    %cst_40 = arith.constant 2.000000e-01 : f32
    %97 = vector.broadcast %cst_40 : f32 to vector<32x256xf32>
    %98 = arith.mulf %97, %94 : vector<32x256xf32>
    %99 = arith.select %96, %94, %98 : vector<32x256xi1>, vector<32x256xf32>
    %c0_41 = arith.constant 0 : index
    %c0_42 = arith.constant 0 : index
    %100 = vector.load %arg12[%c0_41, %c0_42] : memref<32x256xf32, #tpu.memory_space<vmem>>, vector<32x256xf32>
    tpu.vector_store %arg12[%c0_41, %c0_42], %99 {strides = array<i32>} : memref<32x256xf32, #tpu.memory_space<vmem>>, vector<32x256xf32>,
    %101 = arith.addf %99, %68 : vector<32x256xf32>
    %c0_43 = arith.constant 0 : index
    %c0_44 = arith.constant 0 : index
    %102 = vector.load %arg9[%c0_43, %c0_44] : memref<128x32xbf16, #tpu.memory_space<vmem>>, vector<128x32xbf16>
    %103 = arith.truncf %101 : vector<32x256xf32> to vector<32x256xbf16>
    %cst_45 = arith.constant dense<0.000000e+00> : vector<128x256xf32>
    %104 = tpu.matmul %102, %103, %cst_45 {dimension_numbers = #tpu.dot_dimension_numbers<[1], [0], [0], [1], [0, 0, 1, 1], [], []>} : vector<128x32xbf16>, vector<32x256xbf16>, vector<128x256xf32> -> vector<128x256xf32>
    %c0_46 = arith.constant 0 : index
    %c0_47 = arith.constant 0 : index
    %105 = vector.load %arg10[%c0_46, %c0_47] : memref<128x1xf32, #tpu.memory_space<vmem>>, vector<128x1xf32>
    %106 = vector.broadcast %105 : vector<128x1xf32> to vector<128x256xf32>
    %107 = arith.addf %104, %106 : vector<128x256xf32>
    %cst_48 = arith.constant dense<0xFF800000> : vector<256xf32>
    %108 = vector.multi_reduction <maximumf>, %107, %cst_48 [0] : vector<128x256xf32> to vector<256xf32>
    %109 = vector.shape_cast %108 : vector<256xf32> to vector<1x256xf32>
    %110 = vector.broadcast %109 : vector<1x256xf32> to vector<128x256xf32>
    %111 = arith.subf %107, %110 : vector<128x256xf32>
    %112 = math.exp %111 : vector<128x256xf32>
    %cst_49 = arith.constant dense<0.000000e+00> : vector<256xf32>
    %113 = vector.multi_reduction <add>, %112, %cst_49 [0] : vector<128x256xf32> to vector<256xf32>
    %114 = vector.shape_cast %113 : vector<256xf32> to vector<1x256xf32>
    %115 = math.log %114 : vector<1x256xf32>
    %116 = arith.addf %115, %109 : vector<1x256xf32>
    %117 = vector.broadcast %116 : vector<1x256xf32> to vector<128x256xf32>
    %118 = arith.subf %107, %117 : vector<128x256xf32>
    %119 = math.exp %118 : vector<128x256xf32>
    %c0_50 = arith.constant 0 : index
    %c0_51 = arith.constant 0 : index
    %120 = vector.load %arg11[%c0_50, %c0_51] : memref<128x256xf32, #tpu.memory_space<vmem>>, vector<128x256xf32>
    tpu.vector_store %arg11[%c0_50, %c0_51], %119 {strides = array<i32>} : memref<128x256xf32, #tpu.memory_space<vmem>>, vector<128x256xf32>,
    %c3_i32_52 = arith.constant 3 : i32
    %121 = arith.cmpi eq, %arg0, %c3_i32_52 : i32
    %122 = arith.extui %121 : i1 to i32
    %c0_i32_53 = arith.constant 0 : i32
    %123 = arith.cmpi ne, %122, %c0_i32_53 : i32
    scf.if %123 {
      %c0_54 = arith.constant 0 : index
      %c0_55 = arith.constant 0 : index
      %124 = vector.load %arg3[%c0_54, %c0_55] : memref<1x256xi32, #tpu.memory_space<vmem>>, vector<1x256xi32>
      %125 = tpu.iota {dimensions = array<i32: 0>} : vector<128x256xi32>
      %126 = vector.broadcast %124 : vector<1x256xi32> to vector<128x256xi32>
      %127 = arith.cmpi eq, %125, %126 : vector<128x256xi32>
      %128 = arith.extui %127 : vector<128x256xi1> to vector<128x256xi32>
      %129 = arith.sitofp %128 : vector<128x256xi32> to vector<128x256xf32>
      %c-100_i32 = arith.constant -100 : i32
      %130 = vector.broadcast %c-100_i32 : i32 to vector<1x256xi32>
      %131 = arith.cmpi ne, %124, %130 : vector<1x256xi32>
      %c300_i32_56 = arith.constant 300 : i32
      %132 = vector.broadcast %c300_i32_56 : i32 to vector<1x256xi32>
      %133 = arith.cmpi slt, %14, %132 : vector<1x256xi32>
      %134 = arith.andi %131, %133 : vector<1x256xi1>
      %135 = arith.extui %134 : vector<1x256xi1> to vector<1x256xi32>
      %136 = arith.sitofp %135 : vector<1x256xi32> to vector<1x256xf32>
      %137 = arith.mulf %129, %118 : vector<128x256xf32>
      %cst_57 = arith.constant dense<0.000000e+00> : vector<256xf32>
      %138 = vector.multi_reduction <add>, %137, %cst_57 [0] : vector<128x256xf32> to vector<256xf32>
      %139 = vector.shape_cast %138 : vector<256xf32> to vector<1x256xf32>
      %cst_58 = arith.constant 0.000000e+00 : f32
      %140 = vector.broadcast %cst_58 : f32 to vector<1x256xf32>
      %141 = arith.subf %140, %139 : vector<1x256xf32>
      %c0_59 = arith.constant 0 : index
      %c0_60 = arith.constant 0 : index
      %142 = vector.load %arg4[%c0_59, %c0_60] : memref<128x1xf32, #tpu.memory_space<vmem>>, vector<128x1xf32>
      %143 = vector.broadcast %142 : vector<128x1xf32> to vector<128x256xf32>
      %144 = arith.mulf %129, %143 : vector<128x256xf32>
      %cst_61 = arith.constant dense<0.000000e+00> : vector<256xf32>
      %145 = vector.multi_reduction <add>, %144, %cst_61 [0] : vector<128x256xf32> to vector<256xf32>
      %146 = vector.shape_cast %145 : vector<256xf32> to vector<1x256xf32>
      %c0_62 = arith.constant 0 : index
      %c0_63 = arith.constant 0 : index
      %147 = vector.load %arg13[%c0_62, %c0_63] : memref<1x2xf32, #tpu.memory_space<vmem>>, vector<1x1xf32>
      %148 = arith.mulf %141, %146 : vector<1x256xf32>
      %149 = arith.mulf %148, %136 : vector<1x256xf32>
      %cst_64 = arith.constant dense<0.000000e+00> : vector<1xf32>
      %150 = vector.multi_reduction <add>, %149, %cst_64 [1] : vector<1x256xf32> to vector<1xf32>
      %151 = vector.shape_cast %150 : vector<1xf32> to vector<1x1xf32>
      %152 = arith.addf %147, %151 : vector<1x1xf32>
      %c0_65 = arith.constant 0 : index
      %c0_66 = arith.constant 0 : index
      %153 = vector.load %arg13[%c0_65, %c0_66] : memref<1x2xf32, #tpu.memory_space<vmem>>, vector<1x1xf32>
      tpu.vector_store %arg13[%c0_65, %c0_66], %152 {strides = array<i32>} : memref<1x2xf32, #tpu.memory_space<vmem>>, vector<1x1xf32>,
      %c0_67 = arith.constant 0 : index
      %c1_68 = arith.constant 1 : index
      %154 = vector.load %arg13[%c0_67, %c1_68] : memref<1x2xf32, #tpu.memory_space<vmem>>, vector<1x1xf32>
      %155 = arith.mulf %146, %136 : vector<1x256xf32>
      %cst_69 = arith.constant dense<0.000000e+00> : vector<1xf32>
      %156 = vector.multi_reduction <add>, %155, %cst_69 [1] : vector<1x256xf32> to vector<1xf32>
      %157 = vector.shape_cast %156 : vector<1xf32> to vector<1x1xf32>
      %158 = arith.addf %154, %157 : vector<1x1xf32>
      %c0_70 = arith.constant 0 : index
      %c1_71 = arith.constant 1 : index
      %159 = vector.load %arg13[%c0_70, %c1_71] : memref<1x2xf32, #tpu.memory_space<vmem>>, vector<1x1xf32>
      tpu.vector_store %arg13[%c0_70, %c1_71], %158 {strides = array<i32>} : memref<1x2xf32, #tpu.memory_space<vmem>>, vector<1x1xf32>,
    } else {
    }
    return
  }
  func.func @transform_0(%arg0: i32, %arg1: i32) -> (i32, i32) {
    %c0_i32 = arith.constant 0 : i32
    %c0_i32_0 = arith.constant 0 : i32
    return %c0_i32, %arg1 : i32, i32
  }
  func.func @transform_1(%arg0: i32, %arg1: i32) -> (i32, i32) {
    %c0_i32 = arith.constant 0 : i32
    %c0_i32_0 = arith.constant 0 : i32
    return %c0_i32, %arg1 : i32, i32
  }
  func.func @transform_2(%arg0: i32, %arg1: i32) -> (i32, i32) {
    %c0_i32 = arith.constant 0 : i32
    %c0_i32_0 = arith.constant 0 : i32
    %c0_i32_1 = arith.constant 0 : i32
    return %c0_i32, %c0_i32_0 : i32, i32
  }
  func.func @transform_3(%arg0: i32, %arg1: i32) -> (i32, i32) {
    %c0_i32 = arith.constant 0 : i32
    %c0_i32_0 = arith.constant 0 : i32
    %c0_i32_1 = arith.constant 0 : i32
    return %c0_i32, %c0_i32_0 : i32, i32
  }
  func.func @transform_4(%arg0: i32, %arg1: i32) -> (i32, i32) {
    %c0_i32 = arith.constant 0 : i32
    %c0_i32_0 = arith.constant 0 : i32
    %c0_i32_1 = arith.constant 0 : i32
    return %c0_i32, %c0_i32_0 : i32, i32
  }
  func.func @transform_5(%arg0: i32, %arg1: i32) -> (i32, i32) {
    %c0_i32 = arith.constant 0 : i32
    %c0_i32_0 = arith.constant 0 : i32
    %c0_i32_1 = arith.constant 0 : i32
    return %c0_i32, %c0_i32_0 : i32, i32
  }
  func.func @transform_6(%arg0: i32, %arg1: i32) -> (i32, i32) {
    %c0_i32 = arith.constant 0 : i32
    %c0_i32_0 = arith.constant 0 : i32
    %c0_i32_1 = arith.constant 0 : i32
    return %c0_i32, %c0_i32_0 : i32, i32
  }
  func.func @transform_7(%arg0: i32, %arg1: i32) -> (i32, i32) {
    %c0_i32 = arith.constant 0 : i32
    %c0_i32_0 = arith.constant 0 : i32
    %c0_i32_1 = arith.constant 0 : i32
    return %c0_i32, %c0_i32_0 : i32, i32
  }
  func.func @transform_8(%arg0: i32, %arg1: i32) -> (i32, i32) {
    %c0_i32 = arith.constant 0 : i32
    %c0_i32_0 = arith.constant 0 : i32
    %c0_i32_1 = arith.constant 0 : i32
    return %c0_i32, %c0_i32_0 : i32, i32
  }
  func.func @transform_9(%arg0: i32, %arg1: i32) -> (i32, i32) {
    %c0_i32 = arith.constant 0 : i32
    %c0_i32_0 = arith.constant 0 : i32
    return %c0_i32, %arg1 : i32, i32
  }
  func.func @transform_10(%arg0: i32, %arg1: i32) -> (i32, i32) {
    %c0_i32 = arith.constant 0 : i32
    %c0_i32_0 = arith.constant 0 : i32
    return %c0_i32, %arg1 : i32, i32
  }
  func.func @transform_11(%arg0: i32, %arg1: i32) -> (i32, i32) {
    %c0_i32 = arith.constant 0 : i32
    %c0_i32_0 = arith.constant 0 : i32
    %c0_i32_1 = arith.constant 0 : i32
    return %c0_i32, %c0_i32_0 : i32, i32
  }
}

</mosaic_0001>

<bundles_post_ra>
// kernel: tpu_custom_call.1
= control target key start
LH: loop header
LB: loop body
LE: loop exit
PB: predicated region body
PF: predicated region fallthrough
CT: control target
= control target key end

     0   :  { %s4450_s0 = inlined_call_operand.vmem [shape: f32[4,512], index: 0, kind: input, shape index: {}]   ;;  %s4451_s1 = inlined_call_operand.vmem [shape: s32[1,512], index: 1, kind: input, shape index: {}]   ;;  %s4452_s2 = inlined_call_operand.vmem [shape: f32[128,1], index: 2, kind: input, shape index: {}]   ;;  %s4453_s3 = inlined_call_operand.vmem [shape: bf16[32,4], index: 3, kind: input, shape index: {}]   ;;  %s4454_s4 = inlined_call_operand.vmem [shape: f32[32,1], index: 4, kind: input, shape index: {}]   ;;  %s4455_s5 = inlined_call_operand.vmem [shape: bf16[32,32], index: 5, kind: input, shape index: {}]   ;;  %s4456_s6 = inlined_call_operand.vmem [shape: f32[32,1], index: 6, kind: input, shape index: {}]   ;;  %s4457_s7 = inlined_call_operand.vmem [shape: bf16[128,32], index: 7, kind: input, shape index: {}]   ;;  %s4458_s8 = inlined_call_operand.vmem [shape: f32[128,1], index: 8, kind: input, shape index: {}]   ;;  %s4459_s9 = inlined_call_operand.hbm [shape: f32[128,512], index: 9, kind: output, shape index: {0}]   ;;  %s4460_s10 = inlined_call_operand.hbm [shape: f32[32,512], index: 10, kind: output, shape index: {1}]   ;;  %s4461_s11 = inlined_call_operand.hbm [shape: f32[1,2], index: 11, kind: output, shape index: {2}]  }
   0x1   :  { %4470 = sst [smem:[#allocation19_spill]] %s4450_s0 }
   0x2   :  { %17 = vsyncpa [#allocation4], 0 }
   0x3   :  { %19 = vsyncpa [#allocation4 + $0x1], 0 }
   0x4   :  { %20 = vsyncpa [#allocation6], 0 }
   0x5   :  { %22 = vsyncpa [#allocation6 + $0x1], 0  ;;  %s3084_s17 = smov 0   ;;  %s3086_s18 = smov 0  }
   0x6   :  { %s3088_s19 = smov 0   ;;  %s3090_s20 = smov 0  }
   0x7   :  { %s3092_s21 = smov 0   ;;  %s3094_s22 = smov 0  }
   0x8   :  { %s3096_s23 = smov 0   ;;  %s3098_s24 = smov 0  }
   0x9 LB: > { %4471 = sst [smem:[#allocation11_spill]] %s2979_s18  ;;  %s4463_s25 = sadd.s32 4294967295, %s3003_s24   ;;  %s3003_s24 = sphi %s3098_s24, %s28_s24   ;;  %s2999_s23 = sphi %s3096_s23, %s4493_s23   ;;  %s2995_s22 = sphi %s3094_s22, %s4492_s22   ;;  %s2991_s21 = sphi %s3092_s21, %s4491_s21   ;;  %s2987_s20 = sphi %s3090_s20, %s4490_s20   ;;  %s2983_s19 = sphi %s3088_s19, %s4489_s19   ;;  %s2979_s18 = sphi %s3086_s18, %s4488_s18   ;;  %s2975_s17 = sphi %s3084_s17, %s4487_s17  }
   0xa   : > { %4472 = sst [smem:[#allocation12_spill]] %s2983_s19  ;;  %s4462_s26 = sadd.s32 4294967294, %s3003_s24  }
   0xb   : > { %4473 = sst [smem:[#allocation13_spill]] %s2995_s22  ;;  %s37_s27 = sadd.s32 1, %s2995_s22 }
   0xc   : > { %4474 = sst [smem:[#allocation14_spill]] %s2999_s23  ;;  %s40_s28 = sadd.s32 1, %s2999_s23 }
   0xd   : > { %p38_p0 = scmp.ge.s32.totalorder %s37_s27, 2  ;;  %s246_s29 = sadd.s32 1, %s2983_s19 }
   0xe   : > { %p256_p1 = scmp.ne.s32.totalorder %s2983_s19, %s2979_s18  ;;  %p3133_p2 = scmp.eq.s32.totalorder %s4463_s25, 7 }
   0xf   : > { %s4495_s27 = smov (%p38_p0, %s37_s27), 0  ;;  %s4497_s28 = smov (!%p38_p0, %s40_s28), %s2999_s23 }
  0x10   : > { %4476 = sst [smem:[#allocation15_spill]] %s4495_s27  ;;  %s243_s12 = ssub.s32 %s2995_s22, %s4495_s27 }
  0x11   : > { %p3144_p3 = por %p3133_p2, %p256_p1  ;;  %p42_p4 = scmp.ge.s32.totalorder %s4497_s28, 4 }
  0x12   : > { %p244_p5 = scmp.eq.s32.totalorder %s243_s12, 0  ;;  %p262_p6 = scmp.ne.s32.totalorder %s2979_s18, %s2975_s17 }
  0x13   : > { %p263_p7 = scmp.eq.s32.totalorder %s4462_s26, 7  ;;  %s4499_s28 = smov (%p42_p4, %s4497_s28), 0 }
  0x14   : > { %4478 = sst [smem:[#allocation16_spill]] %s4499_s28  ;;  %p2470_p9 = scmp.ge.s32.totalorder %s3003_s24, 1 }
  0x15   : > { %s3155_s14 = scalar_select %p244_p5, %s2983_s19, %s246_s29  }
  0x16   : > { %p3157_p8 = por %p263_p7, %p262_p6  ;;  %p366_p10 = scmp.lt.s32.totalorder %s3003_s24, 9 }
  0x17   : > { %4479 = sst [smem:[#allocation17_spill]] %s3155_s14 }
  0x18   : > { %s4480_s15 = scalar_select %p3157_p8, 1, 0 }
  0x19   : > { %p367_p11 = pnand %p2470_p9, %p366_p10 }
  0x1a   : > { %4481 = sst [smem:[#allocation18_spill]] %s4480_s15  ;;  %s3164_s16 = sand.u32 (!%p367_p11), 1, %s2979_s18  }
  0x1b   : > { %370 = sbr.rel (%p367_p11) target bundleno = 2625 (0xa41), region = 56  ;;  %s2473_s12 = sshll.u32 (!%p367_p11), %s2987_s20, 1 }
  0x1c   : > { %s2471_s29 = sshll.u32 (!%p367_p11), %s3164_s16, 8  ;;  %s2472_s26 = sshll.u32 (!%p367_p11), %s3164_s16, 6 }
  0x1d   : > { %p416_p12 = scmp.lt.s32.totalorder (!%p367_p11), %s2473_s12, 3  ;;  %p429_p13 = scmp.eq.s32.totalorder (!%p367_p11), %s2991_s21, 0 }
  0x1e   : > { %p430_p0 = scmp.eq.s32.totalorder (!%p367_p11), %s2987_s20, 0  ;;  %s4482_s0 = sld [smem:[#allocation19_spill]] (!%p367_p11) }
  0x1f   : > { %s3183_s18 = scalar_lea.vmem (!%p367_p11), [#allocation3], %s2471_s29  ;;  %s3185_s15 = scalar_lea.vmem (!%p367_p11), [#allocation5], %s2472_s26 }
  0x20   : > { %p431_p1 = pnand (!%p367_p11), %p430_p0, %p429_p13 }
  0x22   : > { %s4501_s12 = smov (!%p416_p12, %s2473_s12), 3  ;;  %434 = sbr.rel (%p431_p1) target bundleno = 41 (0x29), region = 60 }
  0x23   : > { %s2474_s25 = sshll.u32 %s4501_s12, 2  ;;  %vm435_vm0 = vcmask (!%p431_p1), 64512   ;;  %v3005_v0 = vmov (!%p431_p1), 0.0  }
  0x24   : > { %s419_s19 = scalar_lea.vmem %s4482_s0, %s2474_s25  ;;  %436 = vst.msk [vmem:[#allocation2] sm:$0xff] (!%p431_p1), %vm435_vm0, %v3005_v0  ;;  %437 = vst.msk [vmem:[#allocation2 + $0x8] sm:$0xff] (!%p431_p1), %vm435_vm0, %v3005_v0 }
  0x25   : > { %438 = vst.msk [vmem:[#allocation2 + $0x10] sm:$0xff] (!%p431_p1), %vm435_vm0, %v3005_v0  ;;  %439 = vst.msk [vmem:[#allocation2 + $0x18] sm:$0xff] (!%p431_p1), %vm435_vm0, %v3005_v0 }
  0x29 PF: > { %p440_p4 = scmp.eq.s32.totalorder %s2991_s21, 3 }
  0x2b   : > { %p441_p5 = pnand %p440_p4, %p430_p0 }
  0x2c   : > { %vm445_vm1 = vcmask (!%p441_p5), 8192   ;;  %v3006_v1 = vmov (!%p441_p5), 0.0  }
  0x2d   : > { %444 = sbr.rel (%p441_p5) target bundleno = 52 (0x34), region = 64  ;;  %446 = vst.msk [vmem:[#allocation7] sm:$0x1] (!%p441_p5), %vm445_vm1, %v3006_v1 }
  0x34 PF: > { %v447_v2 = vld [vmem:[%s419_s19] sm:$0xff]  ;;  %vm511_vm2 = vcmask 1041408   ;;  %v448_v3 = vlaneseq  ;;  %s3191_s22 = sshll.u32 %s2987_s20, 8  ;;  %v3007_v7 = vmov 0   ;;  %v472_v9 = vld [vmem:[%s4454_s4 + $0x10] sm:$0xff]  ;;  %v473_v15 = vld [vmem:[%s4454_s4 + $0x18] sm:$0xff] }
  0x35   : > { %v466_v4 = vcombine.high %v447_v2, %v447_v2  ;;  %v468_v5 = vpack.c.bf16 %v447_v2, %v447_v2  ;;  %v452_v6 = vstv %s3191_s22  ;;  %550 = vmatprep.mubr.bf16.mxu0 %v3007_v7  ;;  %560 = vmatprep.mubr.bf16.mxu1 %v3007_v7  ;;  %v470_v12 = vld [vmem:[%s4454_s4] sm:$0xff]  ;;  %v2662_v17 = vld [vmem:[%s4453_s3 + $0x8] sm:$0xff]   ;;  %vm504_vm4 = vcmask 31744   ;;  %p2484_p6 = scmp.ne.s32.totalorder %s2991_s21, 0 }
  0x36   : > { %v449_v8 = vand.u32 127, %v448_v3  ;;  %2659 = vset.pattern.permute.xlu1 %v3007_v7  ;;  %2658 = vset.pattern.permute.xlu0 %v3007_v7  ;;  %v2661_v16 = vld [vmem:[%s4453_s3] sm:$0xff]   ;;  %v471_v18 = vld [vmem:[%s4454_s4 + $0x8] sm:$0xff]  ;;  %v3008_v21 = vmov 0.0   ;;  %vm602_vm6 = vcmask (!%p2484_p6), 7168   ;;  %vm643_vm7 = vcmask (!%p2484_p6), 15368  }
  0x37   : > { %v469_v10 = vpack.c.bf16 %v466_v4, %v466_v4  ;;  %v513_v11 = vsel %vm511_vm2, %v468_v5, 0  ;;  %486 = vperm.xlu1 %2659, %v472_v9   ;;  %476 = vperm.xlu0 %2658, %v470_v12  }
  0x38   : > { %v450_v13 = vadd.s32 128, %v449_v8  ;;  %v453_v14 = vadd.s32 %v452_v6, %v449_v8 }
  0x39   : > { %2481 = vmatprep.subr.msk.bf16.mxu0 %vm511_vm2, %v469_v10  ;;  %2553 = vmatprep.subr.msk.bf16.mxu1 %vm511_vm2, %v469_v10 }
  0x3a   : > { %519 = vmatpush1.bf16.msra.mxu0 %v513_v11  ;;  %2554 = vmatpush1.bf16.msra.mxu1 %v513_v11  ;;  %v454_v19 = vadd.s32 %v452_v6, %v450_v13  ;;  %vm455_vm3 = vcmp.lt.s32.totalorder %v453_v14, 300 }
  0x3b   : > { %v3221_v20 = vsel %vm455_vm3, 1, %v3007_v7  ;;  %v3223_v22 = vsel %vm455_vm3, 1.0, %v3008_v21  ;;  %491 = vperm.xlu1 %2659, %v473_v15   ;;  %481 = vperm.xlu0 %2658, %v471_v18   ;;  %v576_v15 = vld [vmem:[#allocation2 + $0x10] sm:$0xff] (!%p2484_p6) }
  0x3c   : > { %vm456_vm5 = vcmp.lt.s32.totalorder %v454_v19, 300 }
  0x3d   : > { %v3226_v23 = vsel %vm456_vm5, 1, %v3007_v7  ;;  %v3228_v24 = vsel %vm456_vm5, 1.0, %v3008_v21  ;;  %2482 = vmatmul.mubr.msk.bf16.vlgmr.msra.gmra.mrb[0].mxu0 %vm504_vm4, %v2661_v16  ;;  %2483 = vmatmul.mubr.msk.bf16.vlgmr.msra.gmra.mrb[0].mxu1 %vm504_vm4, %v2662_v17  ;;  %v574_v16 = vld [vmem:[#allocation2] sm:$0xff] (!%p2484_p6) }
  0xb6   : > { %v487_v25 = vpop.permute.xlu1 %486  ;;  %v477_v26 = vpop.permute.xlu0 %476 }
  0xba   : > { %v492_v27 = vpop.permute.xlu1 %491  ;;  %v482_v28 = vpop.permute.xlu0 %481 }
 0x10e   : > { %573 = sbr.rel (%p2484_p6) target bundleno = 439 (0x1b7), region = 68 }
 0x110   : > { %v552_v29 = vpop.f32.mrb[0].mxu0  ;;  %v562_v30 = vpop.f32.mrb[0].mxu1 }
 0x111   : > { %v3230_v31 = vadd.f32 %v552_v29, %v477_v26  ;;  %v3232_v32 = vadd.f32 %v562_v30, %v487_v25  ;;  %v554_v33 = vpop.f32.mrb[1].mxu0  ;;  %v564_v34 = vpop.f32.mrb[1].mxu1 }
 0x112   : > { %v3234_v35 = vadd.f32 %v554_v33, %v477_v26  ;;  %v3236_v36 = vadd.f32 %v564_v34, %v487_v25  ;;  %v556_v37 = vpop.f32.mrb[2].mxu0  ;;  %v566_v38 = vpop.f32.mrb[2].mxu1  ;;  %v577_v25 = vld [vmem:[#allocation2 + $0x18] sm:$0xff] (!%p2484_p6)  ;;  %v575_v26 = vld [vmem:[#allocation2 + $0x8] sm:$0xff] (!%p2484_p6) }
 0x113   : > { %v3238_v39 = vadd.f32 %v556_v37, %v482_v28  ;;  %v3240_v40 = vadd.f32 %v566_v38, %v492_v27  ;;  %v558_v41 = vpop.f32.mrb[3].mxu0  ;;  %v568_v42 = vpop.f32.mrb[3].mxu1  ;;  %v582_v45 = vmul.f32 (!%p2484_p6), %v3223_v22, %v3232_v32  ;;  %v578_v47 = vmul.f32 (!%p2484_p6), %v3223_v22, %v3230_v31 }
 0x114   : > { %v3242_v43 = vadd.f32 %v558_v41, %v482_v28  ;;  %v3244_v44 = vadd.f32 %v568_v42, %v492_v27  ;;  %v583_v46 = vmul.f32 (!%p2484_p6), %v3228_v24, %v3236_v36  ;;  %v579_v48 = vmul.f32 (!%p2484_p6), %v3228_v24, %v3234_v35 }
 0x115   : > { %v584_v49 = vmul.f32 %v3223_v22, %v3240_v40  ;;  %v580_v51 = vmul.f32 %v3223_v22, %v3238_v39  ;;  %v611_v55 = vmul.f32 %v3230_v31, %v3230_v31  ;;  %v612_v56 = vmul.f32 %v3234_v35, %v3234_v35 }
 0x116   : > { %v585_v50 = vmul.f32 %v3228_v24, %v3244_v44  ;;  %v581_v52 = vmul.f32 %v3228_v24, %v3242_v43  ;;  %v592_v53 = vadd.f32 %v583_v46, %v582_v45  ;;  %v586_v54 = vadd.f32 %v579_v48, %v578_v47 }
 0x117   : > { %v613_v59 = vmul.f32 %v3238_v39, %v3238_v39  ;;  %v614_v60 = vmul.f32 %v3242_v43, %v3242_v43  ;;  %v619_v61 = vmul.f32 %v3223_v22, %v611_v55  ;;  %v620_v62 = vmul.f32 %v3228_v24, %v612_v56 }
 0x118   : > { %v595_v57 = vadd.f32 %v585_v50, %v584_v49  ;;  %v589_v58 = vadd.f32 %v581_v52, %v580_v51  ;;  %593 = vadd.xlane.f32.xlu1 %v592_v53  ;;  %587 = vadd.xlane.f32.xlu0 %v586_v54  ;;  %v615_v63 = vmul.f32 %v3232_v32, %v3232_v32 }
 0x119   : > { %v621_v0 = vmul.f32 %v3223_v22, %v613_v59  ;;  %v622_v1 = vmul.f32 %v3228_v24, %v614_v60  ;;  %v616_v2 = vmul.f32 %v3236_v36, %v3236_v36  ;;  %v617_v4 = vmul.f32 %v3240_v40, %v3240_v40 }
 0x11a   : > { %v618_v5 = vmul.f32 %v3244_v44, %v3244_v44  ;;  %v627_v6 = vadd.f32 %v620_v62, %v619_v61  ;;  %v623_v9 = vmul.f32 %v3223_v22, %v615_v63 }
 0x11b   : > { %v630_v8 = vadd.f32 %v622_v1, %v621_v0  ;;  %v624_v10 = vmul.f32 %v3228_v24, %v616_v2  ;;  %v625_v11 = vmul.f32 %v3223_v22, %v617_v4 }
 0x11c   : > { %596 = vadd.xlane.f32.xlu1 %v595_v57  ;;  %590 = vadd.xlane.f32.xlu0 %v589_v58  ;;  %v626_v12 = vmul.f32 %v3228_v24, %v618_v5 }
 0x11d   : > { %v633_v13 = vadd.f32 %v624_v10, %v623_v9 }
 0x11e   : > { %v636_v14 = vadd.f32 %v626_v12, %v625_v11 }
 0x120   : > { %628 = vadd.xlane.f32.xlu0 %v627_v6  ;;  %631 = vadd.xlane.f32.xlu1 %v630_v8 }
 0x124   : > { %634 = vadd.xlane.f32.xlu0 %v633_v13  ;;  %637 = vadd.xlane.f32.xlu1 %v636_v14 }
 0x1a5   : > { %v594_v17 = vpop.xlane.xlu1 %593  ;;  %v588_v18 = vpop.xlane.xlu0 %587 }
 0x1a6   : > { %v600_v19 = vadd.f32 %v594_v17, %v576_v15  ;;  %v598_v21 = vadd.f32 %v588_v18, %v574_v16 }
 0x1a8   : > { %605 = vst.msk [vmem:[#allocation2 + $0x10] sm:$0xff] %vm602_vm6, %v600_v19  ;;  %603 = vst.msk [vmem:[#allocation2] sm:$0xff] %vm602_vm6, %v598_v21 }
 0x1a9   : > { %v597_v27 = vpop.xlane.xlu1 %596  ;;  %v591_v28 = vpop.xlane.xlu0 %590 }
 0x1aa   : > { %v601_v29 = vadd.f32 %v597_v27, %v577_v25  ;;  %v599_v30 = vadd.f32 %v591_v28, %v575_v26 }
 0x1ac   : > { %606 = vst.msk [vmem:[#allocation2 + $0x18] sm:$0xff] %vm602_vm6, %v601_v29  ;;  %604 = vst.msk [vmem:[#allocation2 + $0x8] sm:$0xff] %vm602_vm6, %v599_v30 }
 0x1ad   : > { %v629_v33 = vpop.xlane.xlu0 %628  ;;  %v632_v34 = vpop.xlane.xlu1 %631 }
 0x1af   : > { %v607_v37 = vld [vmem:[#allocation2] sm:$0xff]  ;;  %v609_v42 = vld [vmem:[#allocation2 + $0x10] sm:$0xff] }
 0x1b0   : > { %v639_v38 = vadd.f32 %v629_v33, %v607_v37 }
 0x1b1   : > { %v635_v41 = vpop.xlane.xlu0 %634  ;;  %v638_v45 = vpop.xlane.xlu1 %637 }
 0x1b2   : > { %644 = vst.msk [vmem:[#allocation2] sm:$0xff] %vm643_vm7, %v639_v38  ;;  %v641_v46 = vadd.f32 %v635_v41, %v609_v42 }
 0x1b3   : > { %v608_v47 = vld [vmem:[#allocation2 + $0x8] sm:$0xff]  ;;  %v610_v48 = vld [vmem:[#allocation2 + $0x18] sm:$0xff] }
 0x1b4   : > { %v640_v49 = vadd.f32 %v632_v34, %v608_v47  ;;  %646 = vst.msk [vmem:[#allocation2 + $0x10] sm:$0xff] %vm643_vm7, %v641_v46  ;;  %v642_v50 = vadd.f32 %v638_v45, %v610_v48 }
 0x1b6   : > { %645 = vst.msk [vmem:[#allocation2 + $0x8] sm:$0xff] %vm643_vm7, %v640_v49  ;;  %647 = vst.msk [vmem:[#allocation2 + $0x18] sm:$0xff] %vm643_vm7, %v642_v50 }
 0x1b7 PF: > { %2664 = vset.pattern.permute.xlu1 %v3007_v7  ;;  %2663 = vset.pattern.permute.xlu0 %v3007_v7  ;;  %s3009_s27 = smov 1   ;;  %v3010_v63 = vmov 1   ;;  %p2485_p7 = scmp.ne.s32.totalorder %s2991_s21, 1 }
 0x1b8   : > { %vm788_vm8 = vcmask (!%p2485_p7), 23568   ;;  %vm829_vm9 = vcmask (!%p2485_p7), 31768  }
 0x1b9   : > { %v648_v51 = vld [vmem:[#allocation2] sm:$0xff] }
 0x1ba   : > { %v652_v54 = vmul.f32 0.0033333334, %v648_v51 }
 0x1bb   : > { %v650_v52 = vld [vmem:[#allocation2 + $0x10] sm:$0xff] }
 0x1bc   : > { %v654_v55 = vmul.f32 0.0033333334, %v650_v52  ;;  %v656_v58 = vmul.f32 %v652_v54, %v652_v54 }
 0x1bd   : > { %v649_v53 = vld [vmem:[#allocation2 + $0x8] sm:$0xff]  ;;  %v651_v57 = vld [vmem:[#allocation2 + $0x18] sm:$0xff] }
 0x1be   : > { %v653_v56 = vmul.f32 0.0033333334, %v649_v53  ;;  %v658_v59 = vmul.f32 %v654_v55, %v654_v55  ;;  %v655_v60 = vmul.f32 0.0033333334, %v651_v57  ;;  %664 = vrot.lane.b32.xlu0 %v656_v58, %s3009_s27 }
 0x1c0   : > { %668 = vrot.lane.b32.xlu1 %v658_v59, %s3009_s27  ;;  %v657_v61 = vmul.f32 %v653_v56, %v653_v56  ;;  %v659_v62 = vmul.f32 %v655_v60, %v655_v60 }
 0x1c2   : > { %666 = vrot.lane.b32.xlu0 %v657_v61, %s3009_s27 }
 0x1c4   : > { %670 = vrot.lane.b32.xlu1 %v659_v62, %s3009_s27 }
 0x1c6   : > { %686 = vperm.xlu0 %2663, %v652_v54  }
 0x1c8   : > { %691 = vperm.xlu1 %2664, %v653_v56  }
 0x1ca   : > { %701 = vperm.xlu0 %2663, %v655_v60  }
 0x1cc   : > { %696 = vperm.xlu1 %2664, %v654_v55  }
 0x1ce   : > { %2666 = vset.pattern.permute.xlu0 %v3010_v63 }
 0x1d0   : > { %2665 = vset.pattern.permute.xlu1 %v3010_v63 }
 0x230   : > { %v665_v0 = vpop.permute.xlu0 %664 }
 0x231   : > { %v676_v2 = vsub.f32 %v652_v54, %v665_v0 }
 0x232   : > { %v669_v1 = vpop.permute.xlu1 %668 }
 0x233   : > { %v678_v4 = vsub.f32 %v654_v55, %v669_v1  ;;  %v680_v5 = vmax.f32 %v676_v2, 0.0 }
 0x234   : > { %v667_v8 = vpop.permute.xlu0 %666 }
 0x235   : > { %v682_v6 = vmax.f32 %v678_v4, 0.0  ;;  %v712_v10 = vadd.f32 1e-05, %v680_v5  ;;  %v677_v12 = vsub.f32 %v653_v56, %v667_v8 }
 0x236   : > { %v671_v9 = vpop.permute.xlu1 %670 }
 0x237   : > { %v714_v11 = vadd.f32 1e-05, %v682_v6  ;;  %v679_v13 = vsub.f32 %v655_v60, %v671_v9  ;;  %2667 = vrsqrt.f32 %v712_v10  ;;  %v681_v14 = vmax.f32 %v677_v12, 0.0 }
 0x239   : > { %v683_v15 = vmax.f32 %v679_v13, 0.0  ;;  %2669 = vrsqrt.f32 %v714_v11  ;;  %v713_v16 = vadd.f32 1e-05, %v681_v14 }
 0x23b   : > { %v715_v17 = vadd.f32 1e-05, %v683_v15  ;;  %2671 = vrsqrt.f32 %v713_v16 }
 0x23d   : > { %2673 = vrsqrt.f32 %v715_v17 }
 0x241   : > { %v2668_v18 = vpop.eup %2667 }
 0x242   : > { %722 = vperm.xlu1 %2665, %v2668_v18  }
 0x243   : > { %v2670_v19 = vpop.eup %2669 }
 0x245   : > { %v2672_v21 = vpop.eup %2671  ;;  %v687_v27 = vpop.permute.xlu0 %686 }
 0x246   : > { %732 = vperm.xlu1 %2665, %v2670_v19   ;;  %727 = vperm.xlu0 %2666, %v2672_v21   ;;  %v704_v29 = vsub.f32 %v3230_v31, %v687_v27  ;;  %v705_v30 = vsub.f32 %v3234_v35, %v687_v27 }
 0x247   : > { %v2674_v25 = vpop.eup %2673  ;;  %v692_v26 = vpop.permute.xlu1 %691 }
 0x248   : > { %v706_v41 = vsub.f32 %v3238_v39, %v692_v26  ;;  %v707_v42 = vsub.f32 %v3242_v43, %v692_v26 }
 0x249   : > { %v702_v33 = vpop.permute.xlu0 %701 }
 0x24a   : > { %737 = vperm.xlu1 %2665, %v2674_v25   ;;  %v710_v53 = vsub.f32 %v3240_v40, %v702_v33  ;;  %v711_v39 = vsub.f32 %v3244_v44, %v702_v33 }
 0x24b   : > { %v697_v28 = vpop.permute.xlu1 %696 }
 0x24c   : > { %v708_v45 = vsub.f32 %v3232_v32, %v697_v28  ;;  %v709_v46 = vsub.f32 %v3236_v36, %v697_v28 }
 0x2c1   : > { %v723_v34 = vpop.permute.xlu1 %722 }
 0x2c2   : > { %v740_v37 = vmul.f32 %v723_v34, %v704_v29  ;;  %v741_v38 = vmul.f32 %v723_v34, %v705_v30  ;;  %v762_v34 = vld [vmem:[#allocation2 + $0x10] sm:$0xff] (!%p2485_p7) }
 0x2c4   : > { %v3299_v47 = vmax.f32 %v740_v37, 0.0  ;;  %v3301_v48 = vmax.f32 %v741_v38, 0.0  ;;  %v760_v37 = vld [vmem:[#allocation2] sm:$0xff] (!%p2485_p7) }
 0x2c5   : > { %v733_v49 = vpop.permute.xlu1 %732  ;;  %v728_v31 = vpop.permute.xlu0 %727 }
 0x2c6   : > { %v744_v50 = vmul.f32 %v733_v49, %v708_v45  ;;  %v745_v35 = vmul.f32 %v733_v49, %v709_v46  ;;  %v742_v51 = vmul.f32 %v728_v31, %v706_v41  ;;  %v743_v52 = vmul.f32 %v728_v31, %v707_v42  ;;  %759 = sbr.rel (%p2485_p7) target bundleno = 877 (0x36d), region = 72  ;;  %v763_v46 = vld [vmem:[#allocation2 + $0x18] sm:$0xff] (!%p2485_p7)  ;;  %v761_v49 = vld [vmem:[#allocation2 + $0x8] sm:$0xff] (!%p2485_p7) }
 0x2c7   : > { %v764_v60 = vmul.f32 (!%p2485_p7), %v3223_v22, %v3299_v47  ;;  %v765_v61 = vmul.f32 (!%p2485_p7), %v3228_v24, %v3301_v48  ;;  %v797_v5 = vmul.f32 (!%p2485_p7), %v3299_v47, %v3299_v47  ;;  %v798_v6 = vmul.f32 (!%p2485_p7), %v3301_v48, %v3301_v48 }
 0x2c8   : > { %v3305_v54 = vmax.f32 %v744_v50, 0.0  ;;  %v3307_v43 = vmax.f32 %v745_v35, 0.0  ;;  %v3309_v32 = vmax.f32 %v742_v51, 0.0  ;;  %v3311_v36 = vmax.f32 %v743_v52, 0.0 }
 0x2c9   : > { %v738_v55 = vpop.permute.xlu1 %737  ;;  %v772_v4 = vadd.f32 (!%p2485_p7), %v765_v61, %v764_v60  ;;  %v805_v12 = vmul.f32 (!%p2485_p7), %v3223_v22, %v797_v5  ;;  %v806_v13 = vmul.f32 (!%p2485_p7), %v3228_v24, %v798_v6 }
 0x2ca   : > { %v746_v56 = vmul.f32 %v738_v55, %v710_v53  ;;  %v747_v57 = vmul.f32 %v738_v55, %v711_v39  ;;  %v768_v40 = vmul.f32 (!%p2485_p7), %v3223_v22, %v3305_v54  ;;  %v769_v44 = vmul.f32 (!%p2485_p7), %v3228_v24, %v3307_v43 }
 0x2cb   : > { %v766_v0 = vmul.f32 (!%p2485_p7), %v3223_v22, %v3309_v32  ;;  %v767_v1 = vmul.f32 (!%p2485_p7), %v3228_v24, %v3311_v36  ;;  %v799_v10 = vmul.f32 (!%p2485_p7), %v3309_v32, %v3309_v32  ;;  %v800_v11 = vmul.f32 (!%p2485_p7), %v3311_v36, %v3311_v36  ;;  %773 = vadd.xlane.f32.xlu0 (!%p2485_p7), %v772_v4 }
 0x2cc   : > { %v3313_v58 = vmax.f32 %v746_v56, 0.0  ;;  %v3315_v59 = vmax.f32 %v747_v57, 0.0  ;;  %v778_v2 = vadd.f32 (!%p2485_p7), %v769_v44, %v768_v40  ;;  %v801_v14 = vmul.f32 (!%p2485_p7), %v3305_v54, %v3305_v54 }
 0x2cd   : > { %v775_v9 = vadd.f32 %v767_v1, %v766_v0  ;;  %v807_v15 = vmul.f32 %v3223_v22, %v799_v10  ;;  %v808_v16 = vmul.f32 %v3228_v24, %v800_v11  ;;  %v802_v17 = vmul.f32 %v3307_v43, %v3307_v43 }
 0x2ce   : > { %v770_v62 = vmul.f32 %v3223_v22, %v3313_v58  ;;  %v771_v63 = vmul.f32 %v3228_v24, %v3315_v59  ;;  %779 = vadd.xlane.f32.xlu1 %v778_v2  ;;  %v803_v18 = vmul.f32 %v3313_v58, %v3313_v58  ;;  %v804_v19 = vmul.f32 %v3315_v59, %v3315_v59 }
 0x2cf   : > { %v813_v21 = vadd.f32 %v806_v13, %v805_v12  ;;  %v816_v25 = vadd.f32 %v808_v16, %v807_v15  ;;  %v809_v26 = vmul.f32 %v3223_v22, %v801_v14  ;;  %776 = vadd.xlane.f32.xlu0 %v775_v9  ;;  %v810_v27 = vmul.f32 %v3228_v24, %v802_v17 }
 0x2d0   : > { %v781_v8 = vadd.f32 %v771_v63, %v770_v62  ;;  %v811_v28 = vmul.f32 %v3223_v22, %v803_v18  ;;  %v812_v29 = vmul.f32 %v3228_v24, %v804_v19 }
 0x2d1   : > { %v819_v30 = vadd.f32 %v810_v27, %v809_v26 }
 0x2d2   : > { %782 = vadd.xlane.f32.xlu1 %v781_v8  ;;  %v822_v33 = vadd.f32 %v812_v29, %v811_v28 }
 0x2d3   : > { %814 = vadd.xlane.f32.xlu0 %v813_v21 }
 0x2d6   : > { %817 = vadd.xlane.f32.xlu1 %v816_v25 }
 0x2d7   : > { %820 = vadd.xlane.f32.xlu0 %v819_v30 }
 0x2da   : > { %823 = vadd.xlane.f32.xlu1 %v822_v33 }
 0x358   : > { %v774_v41 = vpop.xlane.xlu0 %773 }
 0x359   : > { %v784_v45 = vadd.f32 %v774_v41, %v760_v37 }
 0x35b   : > { %v780_v38 = vpop.xlane.xlu1 %779  ;;  %789 = vst.msk [vmem:[#allocation2] sm:$0xff] %vm788_vm8, %v784_v45 }
 0x35c   : > { %v786_v42 = vadd.f32 %v780_v38, %v762_v34  ;;  %v777_v50 = vpop.xlane.xlu0 %776 }
 0x35d   : > { %v785_v51 = vadd.f32 %v777_v50, %v761_v49 }
 0x35e   : > { %791 = vst.msk [vmem:[#allocation2 + $0x10] sm:$0xff] %vm788_vm8, %v786_v42 }
 0x35f   : > { %v783_v31 = vpop.xlane.xlu1 %782  ;;  %790 = vst.msk [vmem:[#allocation2 + $0x8] sm:$0xff] %vm788_vm8, %v785_v51 }
 0x360   : > { %v787_v35 = vadd.f32 %v783_v31, %v763_v46  ;;  %v815_v52 = vpop.xlane.xlu0 %814 }
 0x362   : > { %792 = vst.msk [vmem:[#allocation2 + $0x18] sm:$0xff] %vm788_vm8, %v787_v35  ;;  %v793_v39 = vld [vmem:[#allocation2] sm:$0xff] }
 0x363   : > { %v818_v53 = vpop.xlane.xlu1 %817  ;;  %v825_v55 = vadd.f32 %v815_v52, %v793_v39 }
 0x364   : > { %v821_v56 = vpop.xlane.xlu0 %820 }
 0x365   : > { %v795_v57 = vld [vmem:[#allocation2 + $0x10] sm:$0xff]  ;;  %830 = vst.msk [vmem:[#allocation2] sm:$0xff] %vm829_vm9, %v825_v55 }
 0x366   : > { %v827_v44 = vadd.f32 %v821_v56, %v795_v57  ;;  %v794_v60 = vld [vmem:[#allocation2 + $0x8] sm:$0xff] }
 0x367   : > { %v824_v40 = vpop.xlane.xlu1 %823  ;;  %v826_v62 = vadd.f32 %v818_v53, %v794_v60 }
 0x368   : > { %832 = vst.msk [vmem:[#allocation2 + $0x10] sm:$0xff] %vm829_vm9, %v827_v44 }
 0x369   : > { %v796_v61 = vld [vmem:[#allocation2 + $0x18] sm:$0xff]  ;;  %831 = vst.msk [vmem:[#allocation2 + $0x8] sm:$0xff] %vm829_vm9, %v826_v62 }
 0x36a   : > { %v828_v63 = vadd.f32 %v824_v40, %v796_v61 }
 0x36c   : > { %833 = vst.msk [vmem:[#allocation2 + $0x18] sm:$0xff] %vm829_vm9, %v828_v63 }
 0x36d PF: > { %v834_v1 = vld [vmem:[#allocation2] sm:$0xff]  ;;  %1023 = vmatprep.mubr.bf16.mxu1 %v3007_v7  ;;  %v3011_v8 = vmov 2   ;;  %v3012_v15 = vmov 3   ;;  %v951_v50 = vld [vmem:[%s4456_s6 + $0x8] sm:$0xff]  ;;  %v952_v35 = vld [vmem:[%s4456_s6 + $0x10] sm:$0xff]  ;;  %vm984_vm10 = vcmask 261120  }
 0x36e   : > { %v838_v5 = vmul.f32 0.0033333334, %v834_v1  ;;  %2676 = vset.pattern.permute.xlu1 %v3011_v8  ;;  %2675 = vset.pattern.permute.xlu0 %v3011_v8  ;;  %v950_v31 = vld [vmem:[%s4456_s6] sm:$0xff]  ;;  %v953_v51 = vld [vmem:[%s4456_s6 + $0x18] sm:$0xff]  ;;  %p2490_p9 = scmp.ne.s32.totalorder %s2991_s21, 2 }
 0x36f   : > { %v836_v0 = vld [vmem:[#allocation2 + $0x10] sm:$0xff]  ;;  %vm1076_vm11 = vcmask (!%p2490_p9), 39968   ;;  %vm1117_vm12 = vcmask (!%p2490_p9), 48168  }
 0x370   : > { %v840_v4 = vmul.f32 0.0033333334, %v836_v0  ;;  %v835_v9 = vld [vmem:[#allocation2 + $0x8] sm:$0xff]  ;;  %v842_v11 = vmul.f32 %v838_v5, %v838_v5 }
 0x371   : > { %v839_v12 = vmul.f32 0.0033333334, %v835_v9 }
 0x372   : > { %v844_v10 = vmul.f32 %v840_v4, %v840_v4  ;;  %850 = vrot.lane.b32.xlu0 %v842_v11, %s3009_s27 }
 0x373   : > { %v837_v2 = vld [vmem:[#allocation2 + $0x18] sm:$0xff]  ;;  %v843_v14 = vmul.f32 %v839_v12, %v839_v12 }
 0x374   : > { %v841_v6 = vmul.f32 0.0033333334, %v837_v2  ;;  %854 = vrot.lane.b32.xlu1 %v844_v10, %s3009_s27 }
 0x376   : > { %v845_v13 = vmul.f32 %v841_v6, %v841_v6  ;;  %852 = vrot.lane.b32.xlu0 %v843_v14, %s3009_s27 }
 0x378   : > { %856 = vrot.lane.b32.xlu1 %v845_v13, %s3009_s27 }
 0x37a   : > { %872 = vperm.xlu0 %2675, %v838_v5  }
 0x37c   : > { %877 = vperm.xlu1 %2676, %v839_v12  }
 0x37e   : > { %2678 = vset.pattern.permute.xlu0 %v3012_v15 }
 0x380   : > { %882 = vperm.xlu1 %2676, %v840_v4  }
 0x384   : > { %887 = vperm.xlu1 %2676, %v841_v6  }
 0x388   : > { %2677 = vset.pattern.permute.xlu1 %v3012_v15 }
 0x3e4   : > { %v851_v17 = vpop.permute.xlu0 %850 }
 0x3e5   : > { %v862_v18 = vsub.f32 %v838_v5, %v851_v17 }
 0x3e6   : > { %v855_v16 = vpop.permute.xlu1 %854 }
 0x3e7   : > { %v866_v19 = vmax.f32 %v862_v18, 0.0  ;;  %v864_v21 = vsub.f32 %v840_v4, %v855_v16  ;;  %v2681_v18 = vld [vmem:[%s4455_s5] sm:$0xff]  }
 0x3e8   : > { %v853_v26 = vpop.permute.xlu0 %852 }
 0x3e9   : > { %v898_v27 = vadd.f32 1e-05, %v866_v19  ;;  %v863_v29 = vsub.f32 %v839_v12, %v853_v26  ;;  %v868_v34 = vmax.f32 %v864_v21, 0.0  ;;  %v2682_v19 = vld [vmem:[%s4455_s5 + $0x8] sm:$0xff]  }
 0x3ea   : > { %v857_v25 = vpop.permute.xlu1 %856 }
 0x3eb   : > { %v865_v28 = vsub.f32 %v841_v6, %v857_v25  ;;  %v867_v33 = vmax.f32 %v863_v29, 0.0  ;;  %2683 = vrsqrt.f32 %v898_v27  ;;  %v900_v41 = vadd.f32 1e-05, %v868_v34 }
 0x3ed   : > { %v869_v30 = vmax.f32 %v865_v28, 0.0  ;;  %v899_v38 = vadd.f32 1e-05, %v867_v33 }
 0x3ef   : > { %v901_v37 = vadd.f32 1e-05, %v869_v30 }
 0x3f1   : > { %2685 = vrsqrt.f32 %v901_v37 }
 0x3f2   : > { %2687 = vrsqrt.f32 %v899_v38 }
 0x3f3   : > { %2689 = vrsqrt.f32 %v900_v41 }
 0x3f5   : > { %v2684_v42 = vpop.eup %2683 }
 0x3f6   : > { %908 = vperm.xlu1 %2677, %v2684_v42  }
 0x3f9   : > { %v873_v39 = vpop.permute.xlu0 %872 }
 0x3fa   : > { %v890_v56 = vsub.f32 %v3299_v47, %v873_v39  ;;  %v891_v57 = vsub.f32 %v3301_v48, %v873_v39 }
 0x3fb   : > { %v2686_v45 = vpop.eup %2685  ;;  %v878_v52 = vpop.permute.xlu1 %877 }
 0x3fc   : > { %v2688_v46 = vpop.eup %2687  ;;  %923 = vperm.xlu1 %2677, %v2686_v45   ;;  %v892_v61 = vsub.f32 %v3309_v32, %v878_v52  ;;  %v893_v62 = vsub.f32 %v3311_v36, %v878_v52 }
 0x3fd   : > { %913 = vperm.xlu0 %2678, %v2688_v46   ;;  %v2690_v49 = vpop.eup %2689 }
 0x3ff   : > { %v883_v53 = vpop.permute.xlu1 %882 }
 0x400   : > { %2680 = vset.pattern.permute.xlu1 %v3007_v7  ;;  %v894_v48 = vsub.f32 %v3305_v54, %v883_v53  ;;  %v895_v5 = vsub.f32 %v3307_v43, %v883_v53 }
 0x401   : > { %918 = vperm.xlu0 %2678, %v2690_v49   ;;  %961 = vperm.xlu1 %2680, %v951_v50  }
 0x403   : > { %v888_v55 = vpop.permute.xlu1 %887 }
 0x404   : > { %v896_v1 = vsub.f32 %v3313_v58, %v888_v55  ;;  %v897_v2 = vsub.f32 %v3315_v59, %v888_v55 }
 0x405   : > { %2679 = vset.pattern.permute.xlu0 %v3007_v7  ;;  %966 = vperm.xlu1 %2680, %v952_v35  }
 0x406   : > { %956 = vperm.xlu0 %2679, %v950_v31  }
 0x40a   : > { %971 = vperm.xlu0 %2679, %v953_v51  }
 0x475   : > { %v909_v40 = vpop.permute.xlu1 %908 }
 0x476   : > { %v3379_v44 = vmul.f32 %v909_v40, %v890_v56  ;;  %v3381_v60 = vmul.f32 %v909_v40, %v891_v57 }
 0x478   : > { %v934_v6 = vmax.f32 %v3379_v44, 0.0  ;;  %v935_v32 = vmax.f32 %v3381_v60, 0.0 }
 0x47b   : > { %v924_v63 = vpop.permute.xlu1 %923 }
 0x47c   : > { %v914_v0 = vpop.permute.xlu0 %913  ;;  %v3395_v8 = vmul.f32 %v924_v63, %v896_v1  ;;  %v3397_v36 = vmul.f32 %v924_v63, %v897_v2 }
 0x47d   : > { %v3387_v4 = vmul.f32 %v914_v0, %v892_v61  ;;  %v3389_v47 = vmul.f32 %v914_v0, %v893_v62 }
 0x47e   : > { %v940_v12 = vmax.f32 %v3395_v8, 0.0  ;;  %v941_v13 = vmax.f32 %v3397_v36, 0.0 }
 0x47f   : > { %v936_v58 = vmax.f32 %v3387_v4, 0.0  ;;  %v937_v59 = vmax.f32 %v3389_v47, 0.0 }
 0x480   : > { %v919_v9 = vpop.permute.xlu0 %918  ;;  %v962_v26 = vpop.permute.xlu1 %961 }
 0x481   : > { %v3401_v10 = vmul.f32 %v919_v9, %v894_v48  ;;  %v3403_v11 = vmul.f32 %v919_v9, %v895_v5  ;;  %v947_v54 = vpack.c.bf16 %v937_v59, %v935_v32  ;;  %v946_v43 = vpack.c.bf16 %v936_v58, %v934_v6 }
 0x483   : > { %v938_v14 = vmax.f32 %v3401_v10, 0.0  ;;  %v939_v15 = vmax.f32 %v3403_v11, 0.0  ;;  %991 = vmatprep.subr.bf16.mxu1 %v947_v54 }
 0x484   : > { %992 = vmatpush1.bf16.msra.mxu1 %v946_v43  ;;  %v967_v38 = vpop.permute.xlu1 %966 }
 0x485   : > { %v949_v16 = vpack.c.bf16 %v941_v13, %v939_v15  ;;  %v948_v17 = vpack.c.bf16 %v940_v12, %v938_v14  ;;  %v957_v21 = vpop.permute.xlu0 %956 }
 0x487   : > { %993 = vmatprep.subr.bf16.mxu1 %v949_v16 }
 0x488   : > { %994 = vmatpush1.bf16.msra.mxu1 %v948_v17 }
 0x489   : > { %v972_v46 = vpop.permute.xlu0 %971 }
 0x48b   : > { %2488 = vmatmul.mubr.msk.bf16.vlgmr.msra.gmra.mrb[4].mxu1 %vm984_vm10, %v2681_v18 }
 0x48c   : > { %1033 = vmatprep.mubr.bf16.mxu1 %v3007_v7 }
 0x493   : > { %2489 = vmatmul.mubr.msk.bf16.gmra.mrb[8].mxu1 %vm984_vm10, %v2682_v19 }
 0x55e   : > { %v1025_v25 = vpop.f32.mrb[4].mxu1 }
 0x55f   : > { %v3434_v27 = vadd.f32 %v1025_v25, %v957_v21  ;;  %v1027_v28 = vpop.f32.mrb[5].mxu1 }
 0x560   : > { %v3436_v29 = vadd.f32 %v1027_v28, %v957_v21  ;;  %v1029_v30 = vpop.f32.mrb[6].mxu1 }
 0x561   : > { %v3438_v33 = vadd.f32 %v1029_v30, %v962_v26  ;;  %v1031_v34 = vpop.f32.mrb[7].mxu1  ;;  %v1052_v39 = vmul.f32 (!%p2490_p9), %v3223_v22, %v3434_v27  ;;  %v1085_v0 = vmul.f32 (!%p2490_p9), %v3434_v27, %v3434_v27 }
 0x562   : > { %v3440_v37 = vadd.f32 %v1031_v34, %v962_v26  ;;  %v1053_v55 = vmul.f32 (!%p2490_p9), %v3228_v24, %v3436_v29  ;;  %v1086_v1 = vmul.f32 (!%p2490_p9), %v3436_v29, %v3436_v29 }
 0x563   : > { %v1054_v40 = vmul.f32 (!%p2490_p9), %v3223_v22, %v3438_v33  ;;  %v1087_v5 = vmul.f32 (!%p2490_p9), %v3438_v33, %v3438_v33  ;;  %v1093_v54 = vmul.f32 (!%p2490_p9), %v3223_v22, %v1085_v0 }
 0x564   : > { %1047 = sbr.rel (%p2490_p9) target bundleno = 1549 (0x60d), region = 76  ;;  %v1055_v61 = vmul.f32 (!%p2490_p9), %v3228_v24, %v3440_v37  ;;  %v1060_v63 = vadd.f32 (!%p2490_p9), %v1053_v55, %v1052_v39  ;;  %v1088_v9 = vmul.f32 (!%p2490_p9), %v3440_v37, %v3440_v37  ;;  %v1094_v43 = vmul.f32 (!%p2490_p9), %v3228_v24, %v1086_v1 }
 0x565   : > { %v1095_v17 = vmul.f32 (!%p2490_p9), %v3223_v22, %v1087_v5 }
 0x566   : > { %v1035_v41 = vpop.f32.mrb[8].mxu1  ;;  %v1063_v48 = vadd.f32 (!%p2490_p9), %v1055_v61, %v1054_v40  ;;  %1061 = vadd.xlane.f32.xlu0 (!%p2490_p9), %v1060_v63  ;;  %v1096_v18 = vmul.f32 (!%p2490_p9), %v3228_v24, %v1088_v9  ;;  %v1101_v26 = vadd.f32 (!%p2490_p9), %v1094_v43, %v1093_v54 }
 0x567   : > { %v3442_v42 = vadd.f32 %v1035_v41, %v967_v38  ;;  %v1037_v45 = vpop.f32.mrb[9].mxu1 }
 0x568   : > { %v3444_v49 = vadd.f32 %v1037_v45, %v967_v38  ;;  %v1039_v31 = vpop.f32.mrb[10].mxu1  ;;  %v1104_v28 = vadd.f32 (!%p2490_p9), %v1096_v18, %v1095_v17 }
 0x569   : > { %v3446_v50 = vadd.f32 %v1039_v31, %v972_v46  ;;  %v1041_v35 = vpop.f32.mrb[11].mxu1  ;;  %v1056_v52 = vmul.f32 (!%p2490_p9), %v3223_v22, %v3442_v42  ;;  %v1089_v16 = vmul.f32 (!%p2490_p9), %v3442_v42, %v3442_v42  ;;  %v1050_v31 = vld [vmem:[#allocation2 + $0x10] sm:$0xff] (!%p2490_p9) }
 0x56a   : > { %v3448_v51 = vadd.f32 %v1041_v35, %v972_v46  ;;  %v1057_v53 = vmul.f32 (!%p2490_p9), %v3228_v24, %v3444_v49  ;;  %v1090_v19 = vmul.f32 (!%p2490_p9), %v3444_v49, %v3444_v49  ;;  %1064 = vadd.xlane.f32.xlu0 (!%p2490_p9), %v1063_v48  ;;  %v1048_v35 = vld [vmem:[#allocation2] sm:$0xff] (!%p2490_p9) }
 0x56b   : > { %v1058_v56 = vmul.f32 %v3223_v22, %v3446_v50  ;;  %v1091_v21 = vmul.f32 %v3446_v50, %v3446_v50  ;;  %v1097_v30 = vmul.f32 %v3223_v22, %v1089_v16 }
 0x56c   : > { %v1059_v57 = vmul.f32 %v3228_v24, %v3448_v51  ;;  %v1066_v62 = vadd.f32 %v1057_v53, %v1056_v52  ;;  %v1092_v25 = vmul.f32 %v3448_v51, %v3448_v51  ;;  %v1098_v34 = vmul.f32 %v3228_v24, %v1090_v19 }
 0x56d   : > { %v1099_v38 = vmul.f32 %v3223_v22, %v1091_v21 }
 0x56e   : > { %v1069_v2 = vadd.f32 %v1059_v57, %v1058_v56  ;;  %1067 = vadd.xlane.f32.xlu1 %v1066_v62  ;;  %v1100_v41 = vmul.f32 %v3228_v24, %v1092_v25  ;;  %1102 = vadd.xlane.f32.xlu0 %v1101_v26  ;;  %v1107_v45 = vadd.f32 %v1098_v34, %v1097_v30  ;;  %v1051_v56 = vld [vmem:[#allocation2 + $0x18] sm:$0xff]  ;;  %v1049_v57 = vld [vmem:[#allocation2 + $0x8] sm:$0xff] }
 0x570   : > { %v1110_v46 = vadd.f32 %v1100_v41, %v1099_v38 }
 0x572   : > { %1070 = vadd.xlane.f32.xlu1 %v1069_v2  ;;  %1108 = vadd.xlane.f32.xlu0 %v1107_v45 }
 0x576   : > { %1105 = vadd.xlane.f32.xlu1 %v1104_v28 }
 0x57a   : > { %1111 = vadd.xlane.f32.xlu1 %v1110_v46 }
 0x5f3   : > { %v1062_v53 = vpop.xlane.xlu0 %1061 }
 0x5f4   : > { %v1072_v55 = vadd.f32 %v1062_v53, %v1048_v35 }
 0x5f6   : > { %1077 = vst.msk [vmem:[#allocation2] sm:$0xff] %vm1076_vm11, %v1072_v55 }
 0x5f7   : > { %v1065_v40 = vpop.xlane.xlu0 %1064 }
 0x5f8   : > { %v1073_v61 = vadd.f32 %v1065_v40, %v1049_v57 }
 0x5fa   : > { %1078 = vst.msk [vmem:[#allocation2 + $0x8] sm:$0xff] %vm1076_vm11, %v1073_v61 }
 0x5fb   : > { %v1068_v52 = vpop.xlane.xlu1 %1067  ;;  %v1103_v62 = vpop.xlane.xlu0 %1102 }
 0x5fc   : > { %v1074_v39 = vadd.f32 %v1068_v52, %v1050_v31 }
 0x5fd   : > { %v1081_v0 = vld [vmem:[#allocation2] sm:$0xff] }
 0x5fe   : > { %1079 = vst.msk [vmem:[#allocation2 + $0x10] sm:$0xff] %vm1076_vm11, %v1074_v39  ;;  %v1113_v1 = vadd.f32 %v1103_v62, %v1081_v0 }
 0x5ff   : > { %v1071_v22 = vpop.xlane.xlu1 %1070  ;;  %v1109_v2 = vpop.xlane.xlu0 %1108 }
 0x600   : > { %v1075_v24 = vadd.f32 %v1071_v22, %v1051_v56  ;;  %1118 = vst.msk [vmem:[#allocation2] sm:$0xff] %vm1117_vm12, %v1113_v1 }
 0x601   : > { %v1082_v54 = vld [vmem:[#allocation2 + $0x8] sm:$0xff] }
 0x602   : > { %1080 = vst.msk [vmem:[#allocation2 + $0x18] sm:$0xff] %vm1076_vm11, %v1075_v24 }
 0x603   : > { %v1106_v63 = vpop.xlane.xlu1 %1105 }
 0x604   : > { %v1114_v16 = vadd.f32 %v1106_v63, %v1082_v54 }
 0x605   : > { %v1083_v48 = vld [vmem:[#allocation2 + $0x10] sm:$0xff] }
 0x606   : > { %v1115_v9 = vadd.f32 %v1109_v2, %v1083_v48  ;;  %1119 = vst.msk [vmem:[#allocation2 + $0x8] sm:$0xff] %vm1117_vm12, %v1114_v16 }
 0x607   : > { %v1112_v5 = vpop.xlane.xlu1 %1111 }
 0x608   : > { %1120 = vst.msk [vmem:[#allocation2 + $0x10] sm:$0xff] %vm1117_vm12, %v1115_v9 }
 0x609   : > { %v1084_v43 = vld [vmem:[#allocation2 + $0x18] sm:$0xff] }
 0x60a   : > { %v1116_v17 = vadd.f32 %v1112_v5, %v1084_v43 }
 0x60c   : > { %1121 = vst.msk [vmem:[#allocation2 + $0x18] sm:$0xff] %vm1117_vm12, %v1116_v17 }
 0x60d PF: > { %v1122_v19 = vld [vmem:[#allocation2] sm:$0xff]  ;;  %1474 = vmatprep.mubr.bf16.mxu0 %v3007_v7  ;;  %1524 = vmatprep.mubr.bf16.mxu1 %v3007_v7  ;;  %v3013_v30 = vmov 4   ;;  %v1123_v34 = vld [vmem:[#allocation2 + $0x8] sm:$0xff]  ;;  %v3014_v35 = vmov 5   ;;  %v2702_v10 = vld [vmem:[%s4457_s7 + $0x38] sm:$0xff]   ;;  %p2507_p10 = scmp.ne.s32.totalorder %s2991_s21, 3 }
 0x60e   : > { %v1126_v26 = vmul.f32 0.0033333334, %v1122_v19  ;;  %2692 = vset.pattern.permute.xlu1 %v3013_v30  ;;  %2691 = vset.pattern.permute.xlu0 %v3013_v30  ;;  %v1127_v45 = vmul.f32 0.0033333334, %v1123_v34  ;;  %v1283_v16 = vld [vmem:[%s4458_s8 + $0x8] sm:$0xff]  ;;  %v1282_v17 = vld [vmem:[%s4458_s8] sm:$0xff]  ;;  %s4483_s29 = scalar_lea.vmem (!%p2507_p10), %s4451_s1, %s4501_s12 }
 0x60f   : > { %v1124_v18 = vld [vmem:[#allocation2 + $0x10] sm:$0xff]  ;;  %v1285_v19 = vld [vmem:[%s4458_s8 + $0x18] sm:$0xff]  ;;  %v1290_v30 = vld [vmem:[%s4458_s8 + $0x40] sm:$0xff] }
 0x610   : > { %v1128_v25 = vmul.f32 0.0033333334, %v1124_v18  ;;  %v1130_v41 = vmul.f32 %v1126_v26, %v1126_v26  ;;  %v1131_v31 = vmul.f32 %v1127_v45, %v1127_v45  ;;  %v1284_v18 = vld [vmem:[%s4458_s8 + $0x10] sm:$0xff]  ;;  %v1291_v34 = vld [vmem:[%s4458_s8 + $0x48] sm:$0xff]  ;;  %v2703_v11 = vld [vmem:[%s4457_s7 + $0x18] sm:$0xff]  }
 0x611   : > { %v2698_v36 = vld [vmem:[%s4457_s7 + $0x28] sm:$0xff]  }
 0x612   : > { %v1132_v38 = vmul.f32 %v1128_v25, %v1128_v25  ;;  %1138 = vrot.lane.b32.xlu0 %v1130_v41, %s3009_s27  ;;  %v1293_v41 = vld [vmem:[%s4458_s8 + $0x58] sm:$0xff]  ;;  %v2699_v8 = vld [vmem:[%s4457_s7 + $0x8] sm:$0xff]  }
 0x613   : > { %v1125_v21 = vld [vmem:[#allocation2 + $0x18] sm:$0xff] }
 0x614   : > { %v1129_v28 = vmul.f32 0.0033333334, %v1125_v21  ;;  %1142 = vrot.lane.b32.xlu1 %v1132_v38, %s3009_s27  ;;  %v1286_v21 = vld [vmem:[%s4458_s8 + $0x20] sm:$0xff]  ;;  %v1292_v38 = vld [vmem:[%s4458_s8 + $0x50] sm:$0xff] }
 0x616   : > { %v1133_v46 = vmul.f32 %v1129_v28, %v1129_v28  ;;  %1140 = vrot.lane.b32.xlu0 %v1131_v31, %s3009_s27  ;;  %v1296_v31 = vld [vmem:[%s4458_s8 + $0x70] sm:$0xff] }
 0x618   : > { %1144 = vrot.lane.b32.xlu1 %v1133_v46, %s3009_s27  ;;  %v1295_v46 = vld [vmem:[%s4458_s8 + $0x68] sm:$0xff] }
 0x61a   : > { %1160 = vperm.xlu0 %2691, %v1126_v26  }
 0x61c   : > { %1165 = vperm.xlu1 %2692, %v1127_v45  }
 0x61e   : > { %2694 = vset.pattern.permute.xlu0 %v3014_v35 }
 0x620   : > { %1170 = vperm.xlu1 %2692, %v1128_v25  }
 0x624   : > { %1175 = vperm.xlu1 %2692, %v1129_v28  }
 0x628   : > { %2693 = vset.pattern.permute.xlu1 %v3014_v35  ;;  %v1297_v35 = vld [vmem:[%s4458_s8 + $0x78] sm:$0xff] }
 0x684   : > { %v1139_v53 = vpop.permute.xlu0 %1138 }
 0x685   : > { %v1150_v39 = vsub.f32 %v1126_v26, %v1139_v53  ;;  %v1288_v26 = vld [vmem:[%s4458_s8 + $0x30] sm:$0xff] }
 0x686   : > { %v1143_v52 = vpop.permute.xlu1 %1142 }
 0x687   : > { %v1154_v55 = vmax.f32 %v1150_v39, 0.0  ;;  %v1152_v56 = vsub.f32 %v1128_v25, %v1143_v52  ;;  %v1287_v25 = vld [vmem:[%s4458_s8 + $0x28] sm:$0xff] }
 0x688   : > { %v1141_v22 = vpop.permute.xlu0 %1140 }
 0x689   : > { %v1186_v40 = vadd.f32 1e-05, %v1154_v55  ;;  %v1151_v61 = vsub.f32 %v1127_v45, %v1141_v22  ;;  %v1156_v0 = vmax.f32 %v1152_v56, 0.0  ;;  %v1294_v45 = vld [vmem:[%s4458_s8 + $0x60] sm:$0xff] }
 0x68a   : > { %v1145_v57 = vpop.permute.xlu1 %1144 }
 0x68b   : > { %v1153_v24 = vsub.f32 %v1129_v28, %v1145_v57  ;;  %v1155_v63 = vmax.f32 %v1151_v61, 0.0  ;;  %2705 = vrsqrt.f32 %v1186_v40  ;;  %v1188_v48 = vadd.f32 1e-05, %v1156_v0  ;;  %v1289_v28 = vld [vmem:[%s4458_s8 + $0x38] sm:$0xff] }
 0x68d   : > { %v1157_v62 = vmax.f32 %v1153_v24, 0.0  ;;  %v1187_v2 = vadd.f32 1e-05, %v1155_v63 }
 0x68f   : > { %v1189_v1 = vadd.f32 1e-05, %v1157_v62 }
 0x691   : > { %2707 = vrsqrt.f32 %v1189_v1 }
 0x692   : > { %2709 = vrsqrt.f32 %v1187_v2 }
 0x693   : > { %2711 = vrsqrt.f32 %v1188_v48 }
 0x695   : > { %v2706_v5 = vpop.eup %2705 }
 0x696   : > { %1196 = vperm.xlu1 %2693, %v2706_v5  }
 0x699   : > { %v1161_v39 = vpop.permute.xlu0 %1160 }
 0x69a   : > { %v1178_v56 = vsub.f32 %v3434_v27, %v1161_v39  ;;  %v1179_v57 = vsub.f32 %v3436_v29, %v1161_v39 }
 0x69b   : > { %v2708_v9 = vpop.eup %2707  ;;  %v1166_v52 = vpop.permute.xlu1 %1165 }
 0x69c   : > { %v2710_v54 = vpop.eup %2709  ;;  %1211 = vperm.xlu1 %2693, %v2708_v9   ;;  %v1180_v61 = vsub.f32 %v3438_v33, %v1166_v52  ;;  %v1181_v62 = vsub.f32 %v3440_v37, %v1166_v52 }
 0x69d   : > { %1201 = vperm.xlu0 %2694, %v2710_v54   ;;  %v2712_v43 = vpop.eup %2711 }
 0x69f   : > { %v1171_v53 = vpop.permute.xlu1 %1170 }
 0x6a0   : > { %2696 = vset.pattern.permute.xlu1 %v3007_v7  ;;  %v1182_v33 = vsub.f32 %v3442_v42, %v1171_v53  ;;  %v1183_v37 = vsub.f32 %v3444_v49, %v1171_v53 }
 0x6a1   : > { %1206 = vperm.xlu0 %2694, %v2712_v43   ;;  %1305 = vperm.xlu1 %2696, %v1283_v16  }
 0x6a3   : > { %v1176_v55 = vpop.permute.xlu1 %1175 }
 0x6a4   : > { %v1184_v63 = vsub.f32 %v3446_v50, %v1176_v55  ;;  %v1185_v0 = vsub.f32 %v3448_v51, %v1176_v55 }
 0x6a5   : > { %2695 = vset.pattern.permute.xlu0 %v3007_v7  ;;  %1310 = vperm.xlu1 %2696, %v1284_v18  }
 0x6a6   : > { %1300 = vperm.xlu0 %2695, %v1282_v17  }
 0x6a9   : > { %1320 = vperm.xlu1 %2696, %v1286_v21  }
 0x6aa   : > { %1315 = vperm.xlu0 %2695, %v1285_v19  }
 0x6ad   : > { %1330 = vperm.xlu1 %2696, %v1288_v26  }
 0x6ae   : > { %1325 = vperm.xlu0 %2695, %v1287_v25  }
 0x6b1   : > { %1340 = vperm.xlu1 %2696, %v1290_v30  }
 0x6b2   : > { %1335 = vperm.xlu0 %2695, %v1289_v28  }
 0x6b5   : > { %1350 = vperm.xlu1 %2696, %v1292_v38  }
 0x6b6   : > { %1345 = vperm.xlu0 %2695, %v1291_v34  }
 0x6b9   : > { %1360 = vperm.xlu1 %2696, %v1294_v45  }
 0x6ba   : > { %1355 = vperm.xlu0 %2695, %v1293_v41  }
 0x6bd   : > { %1370 = vperm.xlu1 %2696, %v1296_v31  }
 0x6be   : > { %1365 = vperm.xlu0 %2695, %v1295_v46  }
 0x6c2   : > { %1375 = vperm.xlu0 %2695, %v1297_v35  }
 0x715   : > { %v1197_v22 = vpop.permute.xlu1 %1196 }
 0x716   : > { %v1214_v40 = vmul.f32 %v1197_v22, %v1178_v56  ;;  %v1215_v24 = vmul.f32 %v1197_v22, %v1179_v57 }
 0x718   : > { %vm1222_vm13 = vcmp.ge.f32.partialorder %v1214_v40, 0.0  ;;  %vm1223_vm14 = vcmp.ge.f32.partialorder %v1215_v24, 0.0  ;;  %v1230_v1 = vmul.f32 0.2, %v1214_v40  ;;  %v1231_v2 = vmul.f32 0.2, %v1215_v24 }
 0x71a   : > { %v1239_v43 = vsel %vm1223_vm14, %v1215_v24, %v1231_v2  ;;  %v1238_v50 = vsel %vm1222_vm13, %v1214_v40, %v1230_v1 }
 0x71b   : > { %v1212_v27 = vpop.permute.xlu1 %1211  ;;  %1247 = vst [vmem:[%s3185_s15 + $0x8] sm:$0xff] %v1239_v43  ;;  %1246 = vst [vmem:[%s3185_s15] sm:$0xff] %v1238_v50  ;;  %v1255_v38 = vadd.f32 %v1239_v43, %v935_v32  ;;  %v1254_v45 = vadd.f32 %v1238_v50, %v934_v6  ;;  %v2697_v32 = vld [vmem:[%s4457_s7] sm:$0xff]  }
 0x71c   : > { %v1202_v48 = vpop.permute.xlu0 %1201  ;;  %v1220_v29 = vmul.f32 %v1212_v27, %v1184_v63  ;;  %v1221_v5 = vmul.f32 %v1212_v27, %v1185_v0 }
 0x71d   : > { %v1216_v9 = vmul.f32 %v1202_v48, %v1180_v61  ;;  %v1217_v54 = vmul.f32 %v1202_v48, %v1181_v62 }
 0x71e   : > { %vm1228_vm15 = vcmp.ge.f32.partialorder %v1220_v29, 0.0  ;;  %vm1229_vm0 = vcmp.ge.f32.partialorder %v1221_v5, 0.0  ;;  %v1236_v51 = vmul.f32 0.2, %v1220_v29  ;;  %v1237_v16 = vmul.f32 0.2, %v1221_v5 }
 0x71f   : > { %vm1224_vm1 = vcmp.ge.f32.partialorder %v1216_v9, 0.0  ;;  %vm1225_vm2 = vcmp.ge.f32.partialorder %v1217_v54, 0.0  ;;  %v1232_v17 = vmul.f32 0.2, %v1216_v9  ;;  %v1233_v18 = vmul.f32 0.2, %v1217_v54 }
 0x720   : > { %v1207_v19 = vpop.permute.xlu0 %1206  ;;  %v1244_v42 = vsel %vm1228_vm15, %v1220_v29, %v1236_v51  ;;  %v1245_v21 = vsel %vm1229_vm0, %v1221_v5, %v1237_v16 }
 0x721   : > { %v1218_v49 = vmul.f32 %v1207_v19, %v1182_v33  ;;  %v1219_v25 = vmul.f32 %v1207_v19, %v1183_v37  ;;  %1252 = vst [vmem:[%s3185_s15 + $0x30] sm:$0xff] %v1244_v42  ;;  %1253 = vst [vmem:[%s3185_s15 + $0x38] sm:$0xff] %v1245_v21  ;;  %v1241_v26 = vsel %vm1225_vm2, %v1217_v54, %v1233_v18 }
 0x722   : > { %v1240_v28 = vsel %vm1224_vm1, %v1216_v9, %v1232_v17  ;;  %1249 = vst [vmem:[%s3185_s15 + $0x18] sm:$0xff] %v1241_v26  ;;  %v1257_v41 = vadd.f32 %v1241_v26, %v937_v59  ;;  %v1261_v52 = vadd.f32 %v1245_v21, %v941_v13  ;;  %v1260_v44 = vadd.f32 %v1244_v42, %v940_v12  ;;  %v2701_v59 = vld [vmem:[%s4457_s7 + $0x10] sm:$0xff]   ;;  %v2704_v12 = vld [vmem:[%s4457_s7 + $0x20] sm:$0xff]   ;;  %v1306_v13 = vpop.permute.xlu1 %1305 }
 0x723   : > { %vm1226_vm3 = vcmp.ge.f32.partialorder %v1218_v49, 0.0  ;;  %vm1227_vm4 = vcmp.ge.f32.partialorder %v1219_v25, 0.0  ;;  %v1234_v30 = vmul.f32 0.2, %v1218_v49  ;;  %v1235_v34 = vmul.f32 0.2, %v1219_v25 }
 0x724   : > { %1248 = vst [vmem:[%s3185_s15 + $0x10] sm:$0xff] %v1240_v28  ;;  %v1256_v46 = vadd.f32 %v1240_v28, %v936_v58  ;;  %v1279_v53 = vpack.c.bf16 %v1257_v41, %v1255_v38  ;;  %v2700_v58 = vld [vmem:[%s4457_s7 + $0x30] sm:$0xff]  }
 0x725   : > { %v1242_v31 = vsel %vm1226_vm3, %v1218_v49, %v1234_v30  ;;  %v1243_v35 = vsel %vm1227_vm4, %v1219_v25, %v1235_v34 }
 0x726   : > { %1250 = vst [vmem:[%s3185_s15 + $0x20] sm:$0xff] %v1242_v31  ;;  %1251 = vst [vmem:[%s3185_s15 + $0x28] sm:$0xff] %v1243_v35  ;;  %v1278_v39 = vpack.c.bf16 %v1256_v46, %v1254_v45  ;;  %v1259_v60 = vadd.f32 %v1243_v35, %v939_v15  ;;  %v1258_v47 = vadd.f32 %v1242_v31, %v938_v14  ;;  %1442 = vmatprep.subr.bf16.mxu0 %v1279_v53  ;;  %v1301_v14 = vpop.permute.xlu0 %1300  ;;  %v1311_v15 = vpop.permute.xlu1 %1310 }
 0x727   : > { %2555 = vmatprep.subr.bf16.mxu1 %v1279_v53 }
 0x728   : > { %v1281_v4 = vpack.c.bf16 %v1261_v52, %v1259_v60  ;;  %1443 = vmatpush1.bf16.msra.mxu0 %v1278_v39  ;;  %2557 = vmatpush1.bf16.msra.mxu1 %v1278_v39  ;;  %v1280_v6 = vpack.c.bf16 %v1260_v44, %v1258_v47 }
 0x72a   : > { %1444 = vmatprep.subr.bf16.mxu0 %v1281_v4  ;;  %2556 = vmatprep.subr.bf16.mxu1 %v1281_v4  ;;  %v1316_v55 = vpop.permute.xlu0 %1315  ;;  %v1321_v63 = vpop.permute.xlu1 %1320 }
 0x72c   : > { %1445 = vmatpush1.bf16.msra.mxu0 %v1280_v6  ;;  %2558 = vmatpush1.bf16.msra.mxu1 %v1280_v6 }
 0x72e   : > { %v1326_v0 = vpop.permute.xlu0 %1325  ;;  %v1331_v33 = vpop.permute.xlu1 %1330 }
 0x72f   : > { %2499 = vmatmul.mubr.msk.bf16.vlgmr.msra.gmra.mrb[4].mxu0 %vm984_vm10, %v2697_v32  ;;  %2504 = vmatmul.mubr.msk.bf16.vlgmr.msra.gmra.mrb[12].mxu1 %vm984_vm10, %v2698_v36 }
 0x730   : > { %1484 = vmatprep.mubr.bf16.mxu0 %v3007_v7  ;;  %1534 = vmatprep.mubr.bf16.mxu1 %v3007_v7 }
 0x732   : > { %v1336_v37 = vpop.permute.xlu0 %1335  ;;  %v1341_v21 = vpop.permute.xlu1 %1340 }
 0x736   : > { %v1346_v49 = vpop.permute.xlu0 %1345  ;;  %v1351_v41 = vpop.permute.xlu1 %1350 }
 0x737   : > { %2500 = vmatmul.mubr.msk.bf16.gmra.mrb[8].mxu0 %vm984_vm10, %v2699_v8  ;;  %2505 = vmatmul.mubr.msk.bf16.gmra.mrb[16].mxu1 %vm984_vm10, %v2700_v58 }
 0x738   : > { %1494 = vmatprep.mubr.bf16.mxu0 %v3007_v7  ;;  %1544 = vmatprep.mubr.bf16.mxu1 %v3007_v7 }
 0x73a   : > { %v1356_v52 = vpop.permute.xlu0 %1355 }
 0x73f   : > { %2501 = vmatmul.mubr.msk.bf16.gmra.mrb[12].mxu0 %vm984_vm10, %v2701_v59  ;;  %2506 = vmatmul.mubr.msk.bf16.gmra.mrb[20].mxu1 %vm984_vm10, %v2702_v10 }
 0x740   : > { %1504 = vmatprep.mubr.bf16.mxu0 %v3007_v7 }
 0x747   : > { %2502 = vmatmul.mubr.msk.bf16.gmra.mrb[16].mxu0 %vm984_vm10, %v2703_v11 }
 0x748   : > { %1514 = vmatprep.mubr.bf16.mxu0 %v3007_v7 }
 0x74f   : > { %2503 = vmatmul.mubr.msk.bf16.gmra.mrb[20].mxu0 %vm984_vm10, %v2704_v12 }
 0x802   : > { %v1476_v56 = vpop.f32.mrb[4].mxu0  ;;  %v3617_v57 = vpop.f32.mrb[12].mxu1 }
 0x803   : > { %v1478_v22 = vpop.f32.mrb[5].mxu0  ;;  %v3619_v40 = vpop.f32.mrb[13].mxu1  ;;  %v3645_v38 = vadd.f32 %v1476_v56, %v1301_v14 }
 0x804   : > { %v1480_v24 = vpop.f32.mrb[6].mxu0  ;;  %v3621_v61 = vpop.f32.mrb[14].mxu1  ;;  %v3651_v35 = vadd.f32 %v1478_v22, %v1301_v14 }
 0x805   : > { %v1482_v7 = vpop.f32.mrb[7].mxu0  ;;  %v3623_v62 = vpop.f32.mrb[15].mxu1  ;;  %v3657_v60 = vadd.f32 %v1480_v24, %v1306_v13 }
 0x806   : > { %v3665_v6 = vadd.f32 %v1482_v7, %v1306_v13  ;;  %v1366_v7 = vpop.permute.xlu0 %1365 }
 0x80a   : > { %v1486_v1 = vpop.f32.mrb[8].mxu0  ;;  %v3625_v2 = vpop.f32.mrb[16].mxu1 }
 0x80b   : > { %v1488_v27 = vpop.f32.mrb[9].mxu0  ;;  %v3627_v48 = vpop.f32.mrb[17].mxu1  ;;  %v3641_v26 = vadd.f32 %v1486_v1, %v1311_v15 }
 0x80c   : > { %v1490_v29 = vpop.f32.mrb[10].mxu0  ;;  %v3629_v5 = vpop.f32.mrb[18].mxu1  ;;  %v3643_v30 = vadd.f32 %v1488_v27, %v1311_v15 }
 0x80d   : > { %v1492_v9 = vpop.f32.mrb[11].mxu0  ;;  %v3631_v54 = vpop.f32.mrb[19].mxu1  ;;  %v3647_v45 = vadd.f32 %v1490_v29, %v1316_v55  ;;  %v1555_v47 = vmax.f32 %v3645_v38, %v3641_v26  ;;  %v3692_v29 = vadd.f32 %v3617_v57, %v1351_v41 }
 0x80e   : > { %v3653_v53 = vadd.f32 %v1492_v9, %v1316_v55  ;;  %v1576_v32 = vmax.f32 %v3651_v35, %v3643_v30  ;;  %v1361_v15 = vpop.permute.xlu1 %1360 }
 0x80f   : > { %v1556_v58 = vmax.f32 %v3657_v60, %v3647_v45  ;;  %v3709_v57 = vadd.f32 %v3625_v2, %v1361_v15 }
 0x810   : > { %v1577_v11 = vmax.f32 %v3665_v6, %v3653_v53 }
 0x812   : > { %v1496_v43 = vpop.f32.mrb[12].mxu0  ;;  %v3633_v50 = vpop.f32.mrb[20].mxu1 }
 0x813   : > { %v1498_v51 = vpop.f32.mrb[13].mxu0  ;;  %v3635_v16 = vpop.f32.mrb[21].mxu1  ;;  %v3649_v46 = vadd.f32 %v1496_v43, %v1321_v63 }
 0x814   : > { %v1500_v17 = vpop.f32.mrb[14].mxu0  ;;  %v3637_v18 = vpop.f32.mrb[22].mxu1  ;;  %v3655_v39 = vadd.f32 %v1498_v51, %v1321_v63  ;;  %v3699_v51 = vadd.f32 %v3619_v40, %v1351_v41  ;;  %v3717_v40 = vadd.f32 %v3627_v48, %v1361_v15 }
 0x815   : > { %v1502_v19 = vpop.f32.mrb[15].mxu0  ;;  %v3639_v42 = vpop.f32.mrb[23].mxu1  ;;  %v3661_v44 = vadd.f32 %v1500_v17, %v1326_v0  ;;  %v1557_v59 = vmax.f32 %v1555_v47, %v3649_v46 }
 0x816   : > { %v3669_v36 = vadd.f32 %v1502_v19, %v1326_v0  ;;  %v1578_v12 = vmax.f32 %v1576_v32, %v3655_v39  ;;  %v1371_v32 = vpop.permute.xlu1 %1370 }
 0x817   : > { %v1558_v55 = vmax.f32 %v1556_v58, %v3661_v44  ;;  %v3727_v58 = vadd.f32 %v3631_v54, %v1366_v7 }
 0x818   : > { %v1579_v63 = vmax.f32 %v1577_v11, %v3669_v36 }
 0x81a   : > { %v1506_v25 = vpop.f32.mrb[16].mxu0 }
 0x81b   : > { %v1508_v28 = vpop.f32.mrb[17].mxu0  ;;  %v3663_v4 = vadd.f32 %v1506_v25, %v1331_v33  ;;  %v3706_v25 = vadd.f32 %v3621_v61, %v1356_v52  ;;  %v3722_v61 = vadd.f32 %v3629_v5, %v1366_v7 }
 0x81c   : > { %v1510_v34 = vpop.f32.mrb[18].mxu0  ;;  %v3671_v8 = vadd.f32 %v1508_v28, %v1331_v33 }
 0x81d   : > { %v1512_v31 = vpop.f32.mrb[19].mxu0  ;;  %v3676_v10 = vadd.f32 %v1510_v34, %v1336_v37  ;;  %v1559_v56 = vmax.f32 %v1557_v59, %v3663_v4  ;;  %v3732_v59 = vadd.f32 %v3633_v50, %v1371_v32 }
 0x81e   : > { %v3681_v13 = vadd.f32 %v1512_v31, %v1336_v37  ;;  %v1580_v0 = vmax.f32 %v1578_v12, %v3671_v8  ;;  %v3714_v31 = vadd.f32 %v3623_v62, %v1356_v52  ;;  %v1376_v62 = vpop.permute.xlu0 %1375  ;;  %v3739_v12 = vadd.f32 %v3635_v16, %v1371_v32 }
 0x81f   : > { %v1560_v9 = vmax.f32 %v1558_v55, %v3676_v10  ;;  %v3735_v11 = vadd.f32 %v3637_v18, %v1376_v62 }
 0x820   : > { %v1581_v17 = vmax.f32 %v1579_v63, %v3681_v13 }
 0x822   : > { %v1516_v14 = vpop.f32.mrb[20].mxu0 }
 0x823   : > { %v3685_v22 = vadd.f32 %v1516_v14, %v1341_v21  ;;  %v1518_v24 = vpop.f32.mrb[21].mxu0  ;;  %v3742_v14 = vadd.f32 %v3639_v42, %v1376_v62 }
 0x824   : > { %v3689_v1 = vadd.f32 %v1518_v24, %v1341_v21  ;;  %v1520_v27 = vpop.f32.mrb[22].mxu0 }
 0x825   : > { %v1561_v33 = vmax.f32 %v1559_v56, %v3685_v22  ;;  %v3696_v37 = vadd.f32 %v1520_v27, %v1346_v49  ;;  %v1522_v43 = vpop.f32.mrb[23].mxu0 }
 0x826   : > { %v1582_v19 = vmax.f32 %v1580_v0, %v3689_v1  ;;  %v3703_v21 = vadd.f32 %v1522_v43, %v1346_v49 }
 0x827   : > { %v1563_v28 = vmax.f32 %v1561_v33, %v3692_v29  ;;  %v1562_v34 = vmax.f32 %v1560_v9, %v3696_v37 }
 0x828   : > { %v1584_v41 = vmax.f32 %v1582_v19, %v3699_v51  ;;  %v1583_v49 = vmax.f32 %v1581_v17, %v3703_v21 }
 0x829   : > { %v1565_v2 = vmax.f32 %v1563_v28, %v3709_v57  ;;  %v1564_v47 = vmax.f32 %v1562_v34, %v3706_v25 }
 0x82a   : > { %v1586_v52 = vmax.f32 %v1584_v41, %v3717_v40  ;;  %v1585_v48 = vmax.f32 %v1583_v49, %v3714_v31 }
 0x82b   : > { %v1566_v5 = vmax.f32 %v1564_v47, %v3722_v61  ;;  %v1567_v15 = vmax.f32 %v1565_v2, %v3732_v59 }
 0x82c   : > { %v1587_v54 = vmax.f32 %v1585_v48, %v3727_v58  ;;  %v1588_v50 = vmax.f32 %v1586_v52, %v3739_v12 }
 0x82d   : > { %v1568_v55 = vmax.f32 %v1566_v5, %v3735_v11 }
 0x82e   : > { %v1589_v56 = vmax.f32 %v1587_v54, %v3742_v14 }
 0x82f   : > { %v1569_v18 = vmax.f32 %v1567_v15, %v1568_v55 }
 0x830   : > { %v1590_v24 = vmax.f32 %v1588_v50, %v1589_v56 }
 0x831   : > { %v1570_v7 = vrot.slane %v1569_v18, 4 }
 0x832   : > { %v1591_v0 = vrot.slane %v1590_v24, 4 }
 0x833   : > { %v1571_v63 = vmax.f32 %v1569_v18, %v1570_v7 }
 0x834   : > { %v1592_v9 = vmax.f32 %v1590_v24, %v1591_v0 }
 0x835   : > { %v1572_v16 = vrot.slane %v1571_v63, 2 }
 0x836   : > { %v1593_v43 = vrot.slane %v1592_v9, 2 }
 0x837   : > { %v1573_v27 = vmax.f32 %v1571_v63, %v1572_v16 }
 0x838   : > { %v1594_v34 = vmax.f32 %v1592_v9, %v1593_v43 }
 0x839   : > { %v1574_v42 = vrot.slane %v1573_v27, 1 }
 0x83a   : > { %v1595_v62 = vrot.slane %v1594_v34, 1 }
 0x83b   : > { %v3749_v33 = vmax.f32 %v1573_v27, %v1574_v42 }
 0x83c   : > { %v3765_v15 = vmax.f32 %v1594_v34, %v1595_v62 }
 0x83d   : > { %v1597_v17 = vsub.f32 %v3645_v38, %v3749_v33  ;;  %v1599_v19 = vsub.f32 %v3657_v60, %v3749_v33  ;;  %v1601_v28 = vsub.f32 %v3641_v26, %v3749_v33  ;;  %v1603_v41 = vsub.f32 %v3647_v45, %v3749_v33 }
 0x83e   : > { %v1605_v47 = vsub.f32 %v3649_v46, %v3749_v33  ;;  %v1607_v52 = vsub.f32 %v3661_v44, %v3749_v33  ;;  %v1609_v5 = vsub.f32 %v3663_v4, %v3749_v33  ;;  %v1611_v55 = vsub.f32 %v3676_v10, %v3749_v33 }
 0x83f   : > { %v1629_v49 = vmul.f32 1.442695, %v1597_v17  ;;  %v1633_v2 = vmul.f32 1.442695, %v1599_v19  ;;  %v1637_v32 = vmul.f32 1.442695, %v1601_v28  ;;  %v1613_v56 = vsub.f32 %v3685_v22, %v3749_v33 }
 0x840   : > { %v1641_v48 = vmul.f32 1.442695, %v1603_v41  ;;  %v1645_v54 = vmul.f32 1.442695, %v1605_v47  ;;  %v1649_v50 = vmul.f32 1.442695, %v1607_v52  ;;  %v1615_v18 = vsub.f32 %v3696_v37, %v3749_v33 }
 0x841   : > { %2713 = vpow2.f32 %v1629_v49  ;;  %v1653_v24 = vmul.f32 1.442695, %v1609_v5  ;;  %v1598_v7 = vsub.f32 %v3651_v35, %v3765_v15  ;;  %v1657_v63 = vmul.f32 1.442695, %v1611_v55 }
 0x842   : > { %2715 = vpow2.f32 %v1633_v2  ;;  %v1600_v0 = vsub.f32 %v3665_v6, %v3765_v15  ;;  %v1617_v27 = vsub.f32 %v3692_v29, %v3749_v33  ;;  %v1661_v9 = vmul.f32 1.442695, %v1613_v56 }
 0x843   : > { %2717 = vpow2.f32 %v1637_v32  ;;  %v1665_v43 = vmul.f32 1.442695, %v1615_v18  ;;  %v1602_v17 = vsub.f32 %v3643_v30, %v3765_v15  ;;  %v1619_v19 = vsub.f32 %v3706_v25, %v3749_v33 }
 0x844   : > { %2719 = vpow2.f32 %v1641_v48  ;;  %v1631_v34 = vmul.f32 1.442695, %v1598_v7  ;;  %v1604_v49 = vsub.f32 %v3653_v53, %v3765_v15  ;;  %v1635_v2 = vmul.f32 1.442695, %v1600_v0 }
 0x845   : > { %2721 = vpow2.f32 %v1645_v54  ;;  %v1621_v47 = vsub.f32 %v3709_v57, %v3749_v33  ;;  %v1669_v32 = vmul.f32 1.442695, %v1617_v27  ;;  %v1606_v48 = vsub.f32 %v3655_v39, %v3765_v15 }
 0x846   : > { %2723 = vpow2.f32 %v1649_v50  ;;  %v1639_v5 = vmul.f32 1.442695, %v1602_v17  ;;  %v1623_v54 = vsub.f32 %v3722_v61, %v3749_v33  ;;  %v1673_v55 = vmul.f32 1.442695, %v1619_v19 }
 0x847   : > { %2725 = vpow2.f32 %v1653_v24  ;;  %v1608_v18 = vsub.f32 %v3669_v36, %v3765_v15  ;;  %v1643_v24 = vmul.f32 1.442695, %v1604_v49  ;;  %v1625_v7 = vsub.f32 %v3732_v59, %v3749_v33 }
 0x848   : > { %2727 = vpow2.f32 %v1657_v63  ;;  %v1677_v63 = vmul.f32 1.442695, %v1621_v47  ;;  %v1610_v27 = vsub.f32 %v3671_v8, %v3765_v15  ;;  %v1614_v47 = vsub.f32 %v3689_v1, %v3765_v15 }
 0x849   : > { %2729 = vpow2.f32 %v1661_v9  ;;  %v1647_v9 = vmul.f32 1.442695, %v1606_v48 }
 0x84a   : > { %2731 = vpow2.f32 %v1665_v43  ;;  %v1681_v43 = vmul.f32 1.442695, %v1623_v54  ;;  %v1616_v54 = vsub.f32 %v3703_v21, %v3765_v15 }
 0x84b   : > { %v2714_v16 = vpop.eup %2713  ;;  %2733 = vpow2.f32 %v1631_v34  ;;  %v1651_v34 = vmul.f32 1.442695, %v1608_v18 }
 0x84c   : > { %v2716_v42 = vpop.eup %2715  ;;  %2735 = vpow2.f32 %v1635_v2 }
 0x84d   : > { %v1693_v28 = vadd.f32 %v2716_v42, %v2714_v16  ;;  %v2718_v41 = vpop.eup %2717  ;;  %2737 = vpow2.f32 %v1669_v32  ;;  %v1627_v42 = vsub.f32 %v3735_v11, %v3749_v33  ;;  %v1655_v32 = vmul.f32 1.442695, %v1610_v27 }
 0x84e   : > { %v2720_v52 = vpop.eup %2719  ;;  %2739 = vpow2.f32 %v1639_v5 }
 0x84f   : > { %v1694_v62 = vadd.f32 %v2718_v41, %v1693_v28  ;;  %v2722_v56 = vpop.eup %2721  ;;  %2741 = vpow2.f32 %v1673_v55  ;;  %v1612_v28 = vsub.f32 %v3681_v13, %v3765_v15  ;;  %v1685_v41 = vmul.f32 1.442695, %v1625_v7 }
 0x850   : > { %v2724_v16 = vpop.eup %2723  ;;  %2743 = vpow2.f32 %v1643_v24  ;;  %v1618_v24 = vsub.f32 %v3699_v51, %v3765_v15  ;;  %v1663_v7 = vmul.f32 1.442695, %v1614_v47 }
 0x851   : > { %v1695_v50 = vadd.f32 %v2720_v52, %v1694_v62  ;;  %v2726_v19 = vpop.eup %2725  ;;  %2745 = vpow2.f32 %v1677_v63  ;;  %v1689_v52 = vmul.f32 1.442695, %v1627_v42  ;;  %v1659_v55 = vmul.f32 1.442695, %v1612_v28 }
 0x852   : > { %v2728_v2 = vpop.eup %2727  ;;  %2747 = vpow2.f32 %v1647_v9  ;;  %v1620_v9 = vsub.f32 %v3714_v31, %v3765_v15  ;;  %v1667_v42 = vmul.f32 1.442695, %v1616_v54 }
 0x853   : > { %v1696_v0 = vadd.f32 %v2722_v56, %v1695_v50  ;;  %v2730_v62 = vpop.eup %2729  ;;  %2749 = vpow2.f32 %v1681_v43 }
 0x854   : > { %v2732_v5 = vpop.eup %2731  ;;  %2751 = vpow2.f32 %v1651_v34  ;;  %v1622_v34 = vsub.f32 %v3717_v40, %v3765_v15 }
 0x855   : > { %v1697_v17 = vadd.f32 %v2724_v16, %v1696_v0  ;;  %v2734_v50 = vpop.eup %2733  ;;  %2753 = vpow2.f32 %v1685_v41  ;;  %v1671_v41 = vmul.f32 1.442695, %v1618_v24 }
 0x856   : > { %v2736_v18 = vpop.eup %2735  ;;  %2755 = vpow2.f32 %v1655_v32 }
 0x857   : > { %v1698_v49 = vadd.f32 %v2726_v19, %v1697_v17  ;;  %v2738_v63 = vpop.eup %2737  ;;  %2757 = vpow2.f32 %v1689_v52  ;;  %v1714_v16 = vadd.f32 %v2736_v18, %v2734_v50  ;;  %v1675_v52 = vmul.f32 1.442695, %v1620_v9 }
 0x858   : > { %v2740_v27 = vpop.eup %2739  ;;  %2759 = vpow2.f32 %v1659_v55  ;;  %v1626_v50 = vsub.f32 %v3739_v12, %v3765_v15 }
 0x859   : > { %v1699_v48 = vadd.f32 %v2728_v2, %v1698_v49  ;;  %v2742_v43 = vpop.eup %2741  ;;  %v1715_v19 = vadd.f32 %v2740_v27, %v1714_v16  ;;  %2761 = vpow2.f32 %v1663_v7 }
 0x85a   : > { %v2744_v28 = vpop.eup %2743  ;;  %2763 = vpow2.f32 %v1667_v42 }
 0x85b   : > { %v1700_v56 = vadd.f32 %v2730_v62, %v1699_v48  ;;  %v2746_v49 = vpop.eup %2745  ;;  %v1716_v47 = vadd.f32 %v2744_v28, %v1715_v19  ;;  %v1624_v62 = vsub.f32 %v3727_v58, %v3765_v15  ;;  %2765 = vpow2.f32 %v1671_v41 }
 0x85c   : > { %v2748_v32 = vpop.eup %2747  ;;  %2767 = vpow2.f32 %v1675_v52 }
 0x85d   : > { %v1701_v0 = vadd.f32 %v2732_v5, %v1700_v56  ;;  %v2750_v48 = vpop.eup %2749  ;;  %v1717_v54 = vadd.f32 %v2748_v32, %v1716_v47  ;;  %v1679_v56 = vmul.f32 1.442695, %v1622_v34  ;;  %v1683_v16 = vmul.f32 1.442695, %v1624_v62 }
 0x85e   : > { %v2752_v55 = vpop.eup %2751 }
 0x85f   : > { %v1702_v17 = vadd.f32 %v2738_v63, %v1701_v0  ;;  %v2754_v18 = vpop.eup %2753  ;;  %v1718_v7 = vadd.f32 %v2752_v55, %v1717_v54  ;;  %v1628_v0 = vsub.f32 %v3742_v14, %v3765_v15  ;;  %2769 = vpow2.f32 %v1679_v56 }
 0x860   : > { %v2756_v63 = vpop.eup %2755  ;;  %2771 = vpow2.f32 %v1683_v16 }
 0x861   : > { %v1703_v2 = vadd.f32 %v2742_v43, %v1702_v17  ;;  %v2758_v27 = vpop.eup %2757  ;;  %v1719_v42 = vadd.f32 %v2756_v63, %v1718_v7  ;;  %v1687_v17 = vmul.f32 1.442695, %v1626_v50  ;;  %v1691_v34 = vmul.f32 1.442695, %v1628_v0 }
 0x862   : > { %v2760_v43 = vpop.eup %2759 }
 0x863   : > { %v1704_v5 = vadd.f32 %v2746_v49, %v1703_v2  ;;  %v1720_v28 = vadd.f32 %v2760_v43, %v1719_v42  ;;  %v2762_v49 = vpop.eup %2761  ;;  %2773 = vpow2.f32 %v1687_v17 }
 0x864   : > { %v2764_v47 = vpop.eup %2763  ;;  %2775 = vpow2.f32 %v1691_v34 }
 0x865   : > { %v1705_v24 = vadd.f32 %v2750_v48, %v1704_v5  ;;  %v1721_v2 = vadd.f32 %v2762_v49, %v1720_v28  ;;  %v2766_v5 = vpop.eup %2765 }
 0x866   : > { %v2768_v54 = vpop.eup %2767 }
 0x867   : > { %v1706_v9 = vadd.f32 %v2754_v18, %v1705_v24  ;;  %v1722_v48 = vadd.f32 %v2764_v47, %v1721_v2 }
 0x869   : > { %v1707_v19 = vadd.f32 %v2758_v27, %v1706_v9  ;;  %v1723_v52 = vadd.f32 %v2766_v5, %v1722_v48  ;;  %v2770_v56 = vpop.eup %2769 }
 0x86a   : > { %v2772_v7 = vpop.eup %2771 }
 0x86b   : > { %v1708_v41 = vrot.slane %v1707_v19, 4  ;;  %v1724_v18 = vadd.f32 %v2768_v54, %v1723_v52 }
 0x86d   : > { %v1709_v32 = vadd.f32 %v1708_v41, %v1707_v19  ;;  %v1725_v24 = vadd.f32 %v2770_v56, %v1724_v18  ;;  %v2774_v0 = vpop.eup %2773 }
 0x86e   : > { %v2776_v9 = vpop.eup %2775 }
 0x86f   : > { %v1710_v62 = vrot.slane %v1709_v32, 2  ;;  %v1726_v16 = vadd.f32 %v2772_v7, %v1725_v24 }
 0x871   : > { %v1711_v55 = vadd.f32 %v1710_v62, %v1709_v32  ;;  %v1727_v27 = vadd.f32 %v2774_v0, %v1726_v16 }
 0x873   : > { %v1712_v50 = vrot.slane %v1711_v55, 1  ;;  %v1728_v42 = vadd.f32 %v2776_v9, %v1727_v27 }
 0x875   : > { %v1713_v63 = vadd.f32 %v1712_v50, %v1711_v55  ;;  %v1729_v43 = vrot.slane %v1728_v42, 4 }
 0x877   : > { %2777 = vlog2.f32 %v1713_v63  ;;  %v1730_v17 = vadd.f32 %v1729_v43, %v1728_v42 }
 0x879   : > { %v1731_v19 = vrot.slane %v1730_v17, 2 }
 0x87b   : > { %v1732_v49 = vadd.f32 %v1731_v19, %v1730_v17 }
 0x87d   : > { %v1733_v41 = vrot.slane %v1732_v49, 1 }
 0x87f   : > { %v1734_v5 = vadd.f32 %v1733_v41, %v1732_v49 }
 0x881   : > { %v2778_v28 = vpop.eup %2777  ;;  %2779 = vlog2.f32 %v1734_v5 }
 0x882   : > { %v1736_v34 = vmul.f32 0.6931472, %v2778_v28 }
 0x884   : > { %v1739_v2 = vadd.f32 %v1736_v34, %v3749_v33 }
 0x886   : > { %v3819_v47 = vsub.f32 %v3645_v38, %v1739_v2  ;;  %v3822_v32 = vsub.f32 %v3657_v60, %v1739_v2  ;;  %v3825_v48 = vsub.f32 %v3641_v26, %v1739_v2  ;;  %v3828_v62 = vsub.f32 %v3647_v45, %v1739_v2 }
 0x887   : > { %v3831_v52 = vsub.f32 %v3649_v46, %v1739_v2  ;;  %v3834_v54 = vsub.f32 %v3661_v44, %v1739_v2  ;;  %v3837_v33 = vsub.f32 %v3663_v4, %v1739_v2  ;;  %v3843_v55 = vsub.f32 %v3676_v10, %v1739_v2 }
 0x888   : > { %v1773_v38 = vmul.f32 1.442695, %v3819_v47  ;;  %v1777_v60 = vmul.f32 1.442695, %v3822_v32  ;;  %v1781_v26 = vmul.f32 1.442695, %v3825_v48  ;;  %v3847_v46 = vsub.f32 %v3685_v22, %v1739_v2 }
 0x889   : > { %v1785_v45 = vmul.f32 1.442695, %v3828_v62  ;;  %v1789_v44 = vmul.f32 1.442695, %v3831_v52  ;;  %v3851_v4 = vsub.f32 %v3696_v37, %v1739_v2  ;;  %v1793_v18 = vmul.f32 1.442695, %v3834_v54 }
 0x88a   : > { %2781 = vpow2.f32 %v1773_v38  ;;  %v3855_v56 = vsub.f32 %v3692_v29, %v1739_v2  ;;  %v1797_v10 = vmul.f32 1.442695, %v3837_v33  ;;  %v3859_v50 = vsub.f32 %v3706_v25, %v1739_v2 }
 0x88b   : > { %2783 = vpow2.f32 %v1777_v60  ;;  %v1801_v22 = vmul.f32 1.442695, %v3843_v55  ;;  %v3863_v24 = vsub.f32 %v3709_v57, %v1739_v2  ;;  %v1805_v37 = vmul.f32 1.442695, %v3847_v46  ;;  %v2780_v0 = vpop.eup %2779 }
 0x88c   : > { %2785 = vpow2.f32 %v1781_v26  ;;  %v3867_v7 = vsub.f32 %v3722_v61, %v1739_v2  ;;  %v1809_v29 = vmul.f32 1.442695, %v3851_v4  ;;  %v3871_v63 = vsub.f32 %v3732_v59, %v1739_v2 }
 0x88d   : > { %2787 = vpow2.f32 %v1785_v45  ;;  %v1813_v25 = vmul.f32 1.442695, %v3855_v56  ;;  %v3875_v16 = vsub.f32 %v3735_v11, %v1739_v2  ;;  %v1817_v57 = vmul.f32 1.442695, %v3859_v50 }
 0x88e   : > { %2789 = vpow2.f32 %v1789_v44  ;;  %v1821_v61 = vmul.f32 1.442695, %v3863_v24  ;;  %v1825_v59 = vmul.f32 1.442695, %v3867_v7  ;;  %v1738_v27 = vmul.f32 0.6931472, %v2780_v0 }
 0x88f   : > { %2791 = vpow2.f32 %v1793_v18  ;;  %v1829_v42 = vmul.f32 1.442695, %v3871_v63  ;;  %v1833_v43 = vmul.f32 1.442695, %v3875_v16 }
 0x890   : > { %2793 = vpow2.f32 %v1797_v10  ;;  %v3884_v17 = vadd.f32 %v1738_v27, %v3765_v15 }
 0x891   : > { %2795 = vpow2.f32 %v1801_v22 }
 0x892   : > { %2797 = vpow2.f32 %v1805_v37  ;;  %v3890_v49 = vsub.f32 %v3651_v35, %v3884_v17  ;;  %v3895_v15 = vsub.f32 %v3665_v6, %v3884_v17  ;;  %v3899_v41 = vsub.f32 %v3643_v30, %v3884_v17 }
 0x893   : > { %2799 = vpow2.f32 %v1809_v29  ;;  %v3903_v2 = vsub.f32 %v3653_v53, %v3884_v17  ;;  %v3908_v35 = vsub.f32 %v3655_v39, %v3884_v17  ;;  %v3913_v6 = vsub.f32 %v3669_v36, %v3884_v17 }
 0x894   : > { %v2782_v9 = vpop.eup %2781  ;;  %2801 = vpow2.f32 %v1813_v25  ;;  %v3918_v53 = vsub.f32 %v3671_v8, %v3884_v17  ;;  %v1775_v60 = vmul.f32 1.442695, %v3890_v49  ;;  %v3924_v39 = vsub.f32 %v3681_v13, %v3884_v17 }
 0x895   : > { %v2784_v11 = vpop.eup %2783  ;;  %2803 = vpow2.f32 %v1817_v57  ;;  %1837 = vst [vmem:[%s3183_s18] sm:$0xff] %v2782_v9  ;;  %v1779_v45 = vmul.f32 1.442695, %v3895_v15  ;;  %v1783_v36 = vmul.f32 1.442695, %v3899_v41  ;;  %v1787_v44 = vmul.f32 1.442695, %v3903_v2 }
 0x896   : > { %v2786_v19 = vpop.eup %2785  ;;  %2805 = vpow2.f32 %v1821_v61  ;;  %1839 = vst [vmem:[%s3183_s18 + $0x10] sm:$0xff] %v2784_v11  ;;  %v3932_v8 = vsub.f32 %v3689_v1, %v3884_v17  ;;  %v1791_v10 = vmul.f32 1.442695, %v3908_v35  ;;  %v3938_v13 = vsub.f32 %v3703_v21, %v3884_v17 }
 0x897   : > { %v2788_v28 = vpop.eup %2787  ;;  %2807 = vpow2.f32 %v1825_v59  ;;  %1841 = vst [vmem:[%s3183_s18 + $0x20] sm:$0xff] %v2786_v19  ;;  %v1795_v37 = vmul.f32 1.442695, %v3913_v6  ;;  %v3944_v1 = vsub.f32 %v3699_v51, %v3884_v17  ;;  %v1799_v25 = vmul.f32 1.442695, %v3918_v53 }
 0x898   : > { %v2790_v34 = vpop.eup %2789  ;;  %2809 = vpow2.f32 %v1829_v42  ;;  %1843 = vst [vmem:[%s3183_s18 + $0x30] sm:$0xff] %v2788_v28  ;;  %v3950_v21 = vsub.f32 %v3714_v31, %v3884_v17  ;;  %v1803_v0 = vmul.f32 1.442695, %v3924_v39  ;;  %v3956_v51 = vsub.f32 %v3717_v40, %v3884_v17 }
 0x899   : > { %v2792_v5 = vpop.eup %2791  ;;  %2811 = vpow2.f32 %v1833_v43  ;;  %1845 = vst [vmem:[%s3183_s18 + $0x40] sm:$0xff] %v2790_v34  ;;  %v1807_v59 = vmul.f32 1.442695, %v3932_v8  ;;  %v3962_v9 = vsub.f32 %v3727_v58, %v3884_v17  ;;  %v1811_v31 = vmul.f32 1.442695, %v3938_v13 }
 0x89a   : > { %v2794_v38 = vpop.eup %2793  ;;  %1847 = vst [vmem:[%s3183_s18 + $0x50] sm:$0xff] %v2792_v5  ;;  %2813 = vpow2.f32 %v1775_v60  ;;  %v3968_v11 = vsub.f32 %v3739_v12, %v3884_v17  ;;  %v1815_v40 = vmul.f32 1.442695, %v3944_v1  ;;  %v3974_v43 = vsub.f32 %v3742_v14, %v3884_v17 }
 0x89b   : > { %v2796_v30 = vpop.eup %2795  ;;  %1849 = vst [vmem:[%s3183_s18 + $0x60] sm:$0xff] %v2794_v38  ;;  %2815 = vpow2.f32 %v1779_v45  ;;  %v1819_v58 = vmul.f32 1.442695, %v3950_v21  ;;  %v1823_v19 = vmul.f32 1.442695, %v3956_v51 }
 0x89c   : > { %v2798_v26 = vpop.eup %2797  ;;  %1851 = vst [vmem:[%s3183_s18 + $0x70] sm:$0xff] %v2796_v30  ;;  %2817 = vpow2.f32 %v1783_v36  ;;  %v1827_v12 = vmul.f32 1.442695, %v3962_v9  ;;  %v1831_v34 = vmul.f32 1.442695, %v3968_v11 }
 0x89d   : > { %v2800_v18 = vpop.eup %2799  ;;  %1853 = vst [vmem:[%s3183_s18 + $0x80] sm:$0xff] %v2798_v26  ;;  %2819 = vpow2.f32 %v1787_v44  ;;  %v1835_v14 = vmul.f32 1.442695, %v3974_v43 }
 0x89e   : > { %v2802_v22 = vpop.eup %2801  ;;  %1855 = vst [vmem:[%s3183_s18 + $0x90] sm:$0xff] %v2800_v18  ;;  %2821 = vpow2.f32 %v1791_v10 }
 0x89f   : > { %v2804_v29 = vpop.eup %2803  ;;  %1857 = vst [vmem:[%s3183_s18 + $0xa0] sm:$0xff] %v2802_v22  ;;  %2823 = vpow2.f32 %v1795_v37 }
 0x8a0   : > { %v2806_v57 = vpop.eup %2805  ;;  %1859 = vst [vmem:[%s3183_s18 + $0xb0] sm:$0xff] %v2804_v29  ;;  %2825 = vpow2.f32 %v1799_v25 }
 0x8a1   : > { %v2808_v61 = vpop.eup %2807  ;;  %1861 = vst [vmem:[%s3183_s18 + $0xc0] sm:$0xff] %v2806_v57  ;;  %2827 = vpow2.f32 %v1803_v0  ;;  %v2092_v57 = vld [vmem:[%s4452_s2 + $0x10] sm:$0xff] (!%p2507_p10)  ;;  %v2090_v0 = vld [vmem:[%s4452_s2] sm:$0xff] (!%p2507_p10) }
 0x8a2   : > { %v2810_v27 = vpop.eup %2809  ;;  %1863 = vst [vmem:[%s3183_s18 + $0xd0] sm:$0xff] %v2808_v61  ;;  %2829 = vpow2.f32 %v1807_v59  ;;  %v3015_v61 = vmov (!%p2507_p10), 0   ;;  %v2093_v59 = vld [vmem:[%s4452_s2 + $0x18] sm:$0xff] (!%p2507_p10) }
 0x8a3   : > { %v2812_v42 = vpop.eup %2811  ;;  %1865 = vst [vmem:[%s3183_s18 + $0xe0] sm:$0xff] %v2810_v27  ;;  %2831 = vpow2.f32 %v1811_v31  ;;  %2846 = vset.pattern.permute.xlu1 (!%p2507_p10), %v3015_v61  ;;  %2845 = vset.pattern.permute.xlu0 (!%p2507_p10), %v3015_v61  ;;  %v2091_v27 = vld [vmem:[%s4452_s2 + $0x8] sm:$0xff] (!%p2507_p10) }
 0x8a4   : > { %1867 = vst [vmem:[%s3183_s18 + $0xf0] sm:$0xff] %v2812_v42  ;;  %v2814_v28 = vpop.eup %2813  ;;  %2833 = vpow2.f32 %v1815_v40  ;;  %2118 = vperm.xlu1 (!%p2507_p10), %2846, %v2092_v57   ;;  %2108 = vperm.xlu0 (!%p2507_p10), %2845, %v2090_v0   ;;  %v2095_v31 = vld [vmem:[%s4452_s2 + $0x28] sm:$0xff] (!%p2507_p10)  ;;  %v2094_v42 = vld [vmem:[%s4452_s2 + $0x20] sm:$0xff] (!%p2507_p10)  ;;  %v2097_v40 = vld [vmem:[%s4452_s2 + $0x38] sm:$0xff] (!%p2507_p10) }
 0x8a5   : > { %v2816_v5 = vpop.eup %2815  ;;  %2835 = vpow2.f32 %v1819_v58  ;;  %1838 = vst [vmem:[%s3183_s18 + $0x8] sm:$0xff] %v2814_v28  ;;  %v2096_v58 = vld [vmem:[%s4452_s2 + $0x30] sm:$0xff] (!%p2507_p10)  ;;  %v2101_v28 = vld [vmem:[%s4452_s2 + $0x58] sm:$0xff] (!%p2507_p10) }
 0x8a6   : > { %v2818_v17 = vpop.eup %2817  ;;  %2837 = vpow2.f32 %v1823_v19  ;;  %1840 = vst [vmem:[%s3183_s18 + $0x18] sm:$0xff] %v2816_v5  ;;  %v2099_v19 = vld [vmem:[%s4452_s2 + $0x48] sm:$0xff] (!%p2507_p10) }
 0x8a7   : > { %v2820_v38 = vpop.eup %2819  ;;  %2839 = vpow2.f32 %v1827_v12  ;;  %1842 = vst [vmem:[%s3183_s18 + $0x28] sm:$0xff] %v2818_v17  ;;  %v2098_v12 = vld [vmem:[%s4452_s2 + $0x40] sm:$0xff] (!%p2507_p10)  ;;  %v2103_v5 = vld [vmem:[%s4452_s2 + $0x68] sm:$0xff] (!%p2507_p10)  ;;  %v2105_v17 = vld [vmem:[%s4452_s2 + $0x78] sm:$0xff] (!%p2507_p10) }
 0x8a8   : > { %v2822_v30 = vpop.eup %2821  ;;  %2841 = vpow2.f32 %v1831_v34  ;;  %1844 = vst [vmem:[%s3183_s18 + $0x38] sm:$0xff] %v2820_v38  ;;  %2123 = vperm.xlu1 (!%p2507_p10), %2846, %v2093_v59   ;;  %2113 = vperm.xlu0 (!%p2507_p10), %2845, %v2091_v27   ;;  %v2100_v34 = vld [vmem:[%s4452_s2 + $0x50] sm:$0xff] (!%p2507_p10) }
 0x8a9   : > { %v2824_v60 = vpop.eup %2823  ;;  %2843 = vpow2.f32 %v1835_v14  ;;  %1846 = vst [vmem:[%s3183_s18 + $0x48] sm:$0xff] %v2822_v30  ;;  %v2102_v14 = vld [vmem:[%s4452_s2 + $0x60] sm:$0xff] (!%p2507_p10)  ;;  %v2104_v38 = vld [vmem:[%s4452_s2 + $0x70] sm:$0xff] (!%p2507_p10)  ;;  %v4047_v30 = vshrl.u32 (!%p2507_p10), %v448_v3, 7 }
 0x8aa   : > { %v2826_v26 = vpop.eup %2825  ;;  %1848 = vst [vmem:[%s3183_s18 + $0x58] sm:$0xff] %v2824_v60 }
 0x8ab   : > { %v2828_v45 = vpop.eup %2827  ;;  %1850 = vst [vmem:[%s3183_s18 + $0x68] sm:$0xff] %v2826_v26  ;;  %v1892_v60 = vsub.s32 (!%p2507_p10), 0, %v4047_v30  ;;  %v1896_v26 = vsub.s32 (!%p2507_p10), 1, %v4047_v30 }
 0x8ac   : > { %v2830_v36 = vpop.eup %2829  ;;  %1852 = vst [vmem:[%s3183_s18 + $0x78] sm:$0xff] %v2828_v45  ;;  %2133 = vperm.xlu1 (!%p2507_p10), %2846, %v2095_v31   ;;  %2128 = vperm.xlu0 (!%p2507_p10), %2845, %v2094_v42   ;;  %v4056_v45 = vld [vmem:[%s4483_s29] sm:$0x3] (!%p2507_p10) }
 0x8ad   : > { %v2832_v44 = vpop.eup %2831  ;;  %1854 = vst [vmem:[%s3183_s18 + $0x88] sm:$0xff] %v2830_v36  ;;  %v1875_v36 = vadd.s32 (!%p2507_p10), 8, %v4047_v30  ;;  %v4068_v3 = vrot.slane (!%p2507_p10), %v4056_v45, %v1896_v26 }
 0x8ae   : > { %v2834_v18 = vpop.eup %2833  ;;  %1856 = vst [vmem:[%s3183_s18 + $0x98] sm:$0xff] %v2832_v44  ;;  %1871 = sbr.rel (%p2507_p10) target bundleno = 2550 (0x9f6), region = 80  ;;  %v1876_v44 = vadd.s32 (!%p2507_p10), 16, %v4047_v30 }
 0x8af   : > { %v2836_v10 = vpop.eup %2835  ;;  %1858 = vst [vmem:[%s3183_s18 + $0xa8] sm:$0xff] %v2834_v18  ;;  %v4063_v18 = vrot.slane (!%p2507_p10), %v4056_v45, %v1892_v60  ;;  %vm1901_vm6 = vcmp.eq.s32.totalorder (!%p2507_p10), %v1875_v36, %v4068_v3  ;;  %vm1899_vm10 = vcmp.eq.s32.totalorder (!%p2507_p10), %v4047_v30, %v4068_v3 }
 0x8b0   : > { %v2838_v22 = vpop.eup %2837  ;;  %1860 = vst [vmem:[%s3183_s18 + $0xb8] sm:$0xff] %v2836_v10  ;;  %2143 = vperm.xlu1 (!%p2507_p10), %2846, %v2097_v40   ;;  %2138 = vperm.xlu0 (!%p2507_p10), %2845, %v2096_v58   ;;  %vm1903_vm8 = vcmp.eq.s32.totalorder (!%p2507_p10), %v1876_v44, %v4068_v3  ;;  %v3016_v10 = vmov (!%p2507_p10), 0.0   ;;  %v1878_v40 = vadd.s32 (!%p2507_p10), 32, %v4047_v30 }
 0x8b1   : > { %v2840_v37 = vpop.eup %2839  ;;  %1862 = vst [vmem:[%s3183_s18 + $0xc8] sm:$0xff] %v2838_v22  ;;  %vm1900_vm5 = vcmp.eq.s32.totalorder (!%p2507_p10), %v1875_v36, %v4063_v18  ;;  %vm1902_vm7 = vcmp.eq.s32.totalorder (!%p2507_p10), %v1876_v44, %v4063_v18  ;;  %vm1898_vm9 = vcmp.eq.s32.totalorder (!%p2507_p10), %v4047_v30, %v4063_v18  ;;  %v4089_v57 = vsel (!%p2507_p10), %vm1903_vm8, 1.0, %v3016_v10 }
 0x8b2   : > { %v2842_v29 = vpop.eup %2841  ;;  %1864 = vst [vmem:[%s3183_s18 + $0xd8] sm:$0xff] %v2840_v37  ;;  %v4079_v22 = vsel (!%p2507_p10), %vm1900_vm5, 1.0, %v3016_v10  ;;  %v4082_v37 = vsel (!%p2507_p10), %vm1901_vm6, 1.0, %v3016_v10  ;;  %v4092_v0 = vsel (!%p2507_p10), %vm1898_vm9, 1.0, %v3016_v10  ;;  %v4095_v61 = vsel (!%p2507_p10), %vm1899_vm10, 1.0, %v3016_v10 }
 0x8b3   : > { %v2844_v25 = vpop.eup %2843  ;;  %1866 = vst [vmem:[%s3183_s18 + $0xe8] sm:$0xff] %v2842_v29  ;;  %v1877_v29 = vadd.s32 (!%p2507_p10), 24, %v4047_v30  ;;  %v2014_v59 = vmul.f32 (!%p2507_p10), %v4092_v0, %v3819_v47  ;;  %v2015_v27 = vmul.f32 (!%p2507_p10), %v4095_v61, %v3890_v49  ;;  %v2016_v31 = vmul.f32 (!%p2507_p10), %v4079_v22, %v3822_v32 }
 0x8b4   : > { %1868 = vst [vmem:[%s3183_s18 + $0xf8] sm:$0xff] %v2844_v25  ;;  %2153 = vperm.xlu1 (!%p2507_p10), %2846, %v2099_v19   ;;  %2148 = vperm.xlu0 (!%p2507_p10), %2845, %v2098_v12   ;;  %v4086_v25 = vsel (!%p2507_p10), %vm1902_vm7, 1.0, %v3016_v10  ;;  %v2017_v42 = vmul.f32 (!%p2507_p10), %v4082_v37, %v3895_v15  ;;  %v2019_v19 = vmul.f32 (!%p2507_p10), %v4089_v57, %v3899_v41 }
 0x8b5   : > { %v2018_v58 = vmul.f32 %v4086_v25, %v3825_v48  ;;  %vm1904_vm11 = vcmp.eq.s32.totalorder %v1877_v29, %v4063_v18  ;;  %vm1905_vm12 = vcmp.eq.s32.totalorder %v1877_v29, %v4068_v3  ;;  %v2046_v47 = vadd.f32 %v2016_v31, %v2014_v59 }
 0x8b6   : > { %v2067_v49 = vadd.f32 %v2017_v42, %v2015_v27  ;;  %vm1906_vm13 = vcmp.eq.s32.totalorder %v1878_v40, %v4063_v18  ;;  %vm1907_vm14 = vcmp.eq.s32.totalorder %v1878_v40, %v4068_v3  ;;  %v4115_v32 = vsel %vm1904_vm11, 1.0, %v3016_v10 }
 0x8b7   : > { %v4118_v15 = vsel %vm1905_vm12, 1.0, %v3016_v10  ;;  %v1879_v48 = vadd.s32 40, %v4047_v30  ;;  %v2020_v41 = vmul.f32 %v4115_v32, %v3828_v62  ;;  %v1881_v59 = vadd.s32 56, %v4047_v30 }
 0x8b8   : > { %2163 = vperm.xlu1 %2846, %v2101_v28   ;;  %2158 = vperm.xlu0 %2845, %v2100_v34   ;;  %v2021_v12 = vmul.f32 %v4118_v15, %v3903_v2  ;;  %v2047_v28 = vadd.f32 %v2046_v47, %v2018_v58  ;;  %v2068_v34 = vadd.f32 %v2067_v49, %v2019_v19  ;;  %v1882_v58 = vadd.s32 64, %v4047_v30 }
 0x8b9   : > { %vm1908_vm15 = vcmp.eq.s32.totalorder %v1879_v48, %v4063_v18  ;;  %vm1909_vm0 = vcmp.eq.s32.totalorder %v1879_v48, %v4068_v3  ;;  %vm1912_vm3 = vcmp.eq.s32.totalorder %v1881_v59, %v4063_v18  ;;  %vm1913_vm4 = vcmp.eq.s32.totalorder %v1881_v59, %v4068_v3 }
 0x8ba   : > { %v2069_v36 = vadd.f32 %v2068_v34, %v2021_v12  ;;  %v4141_v44 = vsel %vm1908_vm15, 1.0, %v3016_v10  ;;  %v4144_v29 = vsel %vm1909_vm0, 1.0, %v3016_v10  ;;  %vm1914_vm5 = vcmp.eq.s32.totalorder %v1882_v58, %v4063_v18 }
 0x8bb   : > { %vm1915_vm6 = vcmp.eq.s32.totalorder %v1882_v58, %v4068_v3  ;;  %v4167_v49 = vsel %vm1912_vm3, 1.0, %v3016_v10  ;;  %v4170_v48 = vsel %vm1913_vm4, 1.0, %v3016_v10  ;;  %v4178_v34 = vsel %vm1914_vm5, 1.0, %v3016_v10 }
 0x8bc   : > { %2173 = vperm.xlu1 %2846, %v2103_v5   ;;  %2168 = vperm.xlu0 %2845, %v2102_v14   ;;  %v4126_v5 = vsel %vm1906_vm13, 1.0, %v3016_v10  ;;  %v4129_v14 = vsel %vm1907_vm14, 1.0, %v3016_v10  ;;  %vm1994_vm5 = vcmp.ne.s32.totalorder %v4056_v45, 4294967196 }
 0x8bd   : > { %v2022_v62 = vmul.f32 %v4126_v5, %v3831_v52  ;;  %v2023_v2 = vmul.f32 %v4129_v14, %v3908_v35  ;;  %v2024_v52 = vmul.f32 %v4141_v44, %v3834_v54  ;;  %v2025_v35 = vmul.f32 %v4144_v29, %v3913_v6 }
 0x8bf   : > { %v2070_v31 = vadd.f32 %v2069_v36, %v2023_v2 }
 0x8c0   : > { %2183 = vperm.xlu1 %2846, %v2105_v17   ;;  %2178 = vperm.xlu0 %2845, %v2104_v38   ;;  %v1880_v17 = vadd.s32 48, %v4047_v30  ;;  %v2048_v38 = vadd.f32 %v2047_v28, %v2020_v41  ;;  %v1883_v41 = vadd.s32 72, %v4047_v30 }
 0x8c1   : > { %v2071_v47 = vadd.f32 %v2070_v31, %v2025_v35 }
 0x8c2   : > { %vm1910_vm1 = vcmp.eq.s32.totalorder %v1880_v17, %v4063_v18  ;;  %vm1911_vm2 = vcmp.eq.s32.totalorder %v1880_v17, %v4068_v3  ;;  %v2049_v27 = vadd.f32 %v2048_v38, %v2022_v62  ;;  %v4181_v17 = vsel %vm1915_vm6, 1.0, %v3016_v10 }
 0x8c3   : > { %v4152_v42 = vsel %vm1910_vm1, 1.0, %v3016_v10  ;;  %v4155_v40 = vsel %vm1911_vm2, 1.0, %v3016_v10  ;;  %v1884_v62 = vadd.s32 80, %v4047_v30  ;;  %vm1916_vm7 = vcmp.eq.s32.totalorder %v1883_v41, %v4063_v18 }
 0x8c4   : > { %v2026_v54 = vmul.f32 %v4152_v42, %v3837_v33  ;;  %v2027_v6 = vmul.f32 %v4155_v40, %v3918_v53  ;;  %v2050_v19 = vadd.f32 %v2049_v27, %v2024_v52  ;;  %v2028_v33 = vmul.f32 %v4167_v49, %v3843_v55 }
 0x8c5   : > { %v2029_v53 = vmul.f32 %v4170_v48, %v3924_v39  ;;  %vm1917_vm8 = vcmp.eq.s32.totalorder %v1883_v41, %v4068_v3  ;;  %v2030_v55 = vmul.f32 %v4178_v34, %v3847_v46  ;;  %v2031_v39 = vmul.f32 %v4181_v17, %v3932_v8 }
 0x8c6   : > { %v2051_v12 = vadd.f32 %v2050_v19, %v2026_v54  ;;  %v2072_v28 = vadd.f32 %v2071_v47, %v2027_v6  ;;  %vm1918_vm9 = vcmp.eq.s32.totalorder %v1884_v62, %v4063_v18  ;;  %vm1919_vm10 = vcmp.eq.s32.totalorder %v1884_v62, %v4068_v3 }
 0x8c7   : > { %v4193_v36 = vsel %vm1916_vm7, 1.0, %v3016_v10  ;;  %v4196_v59 = vsel %vm1917_vm8, 1.0, %v3016_v10  ;;  %v1885_v52 = vadd.s32 88, %v4047_v30  ;;  %v4204_v31 = vsel %vm1918_vm9, 1.0, %v3016_v10 }
 0x8c8   : > { %v2052_v2 = vadd.f32 %v2051_v12, %v2028_v33  ;;  %v2073_v38 = vadd.f32 %v2072_v28, %v2029_v53  ;;  %v2032_v46 = vmul.f32 %v4193_v36, %v3851_v4  ;;  %v2033_v8 = vmul.f32 %v4196_v59, %v3938_v13 }
 0x8c9   : > { %v4207_v58 = vsel %vm1919_vm10, 1.0, %v3016_v10  ;;  %v1886_v54 = vadd.s32 96, %v4047_v30  ;;  %vm1920_vm11 = vcmp.eq.s32.totalorder %v1885_v52, %v4063_v18  ;;  %vm1921_vm12 = vcmp.eq.s32.totalorder %v1885_v52, %v4068_v3 }
 0x8ca   : > { %v2053_v35 = vadd.f32 %v2052_v2, %v2030_v55  ;;  %v2074_v27 = vadd.f32 %v2073_v38, %v2031_v39  ;;  %v2034_v4 = vmul.f32 %v4204_v31, %v3855_v56  ;;  %v2035_v13 = vmul.f32 %v4207_v58, %v3944_v1 }
 0x8cb   : > { %vm1922_vm13 = vcmp.eq.s32.totalorder %v1886_v54, %v4063_v18  ;;  %vm1923_vm14 = vcmp.eq.s32.totalorder %v1886_v54, %v4068_v3  ;;  %v4219_v47 = vsel %vm1920_vm11, 1.0, %v3016_v10  ;;  %v4222_v41 = vsel %vm1921_vm12, 1.0, %v3016_v10 }
 0x8cc   : > { %v2054_v6 = vadd.f32 %v2053_v35, %v2032_v46  ;;  %v2075_v19 = vadd.f32 %v2074_v27, %v2033_v8  ;;  %v1887_v33 = vadd.s32 104, %v4047_v30  ;;  %v2036_v56 = vmul.f32 %v4219_v47, %v3859_v50 }
 0x8cd   : > { %v2037_v1 = vmul.f32 %v4222_v41, %v3950_v21  ;;  %v4230_v28 = vsel %vm1922_vm13, 1.0, %v3016_v10  ;;  %v4233_v62 = vsel %vm1923_vm14, 1.0, %v3016_v10  ;;  %v1888_v55 = vadd.s32 112, %v4047_v30 }
 0x8ce   : > { %v2055_v53 = vadd.f32 %v2054_v6, %v2034_v4  ;;  %v2076_v12 = vadd.f32 %v2075_v19, %v2035_v13  ;;  %vm1924_vm15 = vcmp.eq.s32.totalorder %v1887_v33, %v4063_v18  ;;  %vm1925_vm0 = vcmp.eq.s32.totalorder %v1887_v33, %v4068_v3 }
 0x8cf   : > { %v2038_v50 = vmul.f32 %v4230_v28, %v3863_v24  ;;  %v2039_v21 = vmul.f32 %v4233_v62, %v3956_v51  ;;  %vm1926_vm1 = vcmp.eq.s32.totalorder %v1888_v55, %v4063_v18  ;;  %vm1927_vm2 = vcmp.eq.s32.totalorder %v1888_v55, %v4068_v3 }
 0x8d0   : > { %v2056_v38 = vadd.f32 %v2055_v53, %v2036_v56  ;;  %v2077_v52 = vadd.f32 %v2076_v12, %v2037_v1  ;;  %v4245_v46 = vsel %vm1924_vm15, 1.0, %v3016_v10  ;;  %v4248_v8 = vsel %vm1925_vm0, 1.0, %v3016_v10 }
 0x8d1   : > { %v1889_v35 = vadd.s32 120, %v4047_v30  ;;  %v2040_v24 = vmul.f32 %v4245_v46, %v3867_v7  ;;  %v2041_v51 = vmul.f32 %v4248_v8, %v3962_v9  ;;  %v4256_v6 = vsel %vm1926_vm1, 1.0, %v3016_v10 }
 0x8d2   : > { %v2057_v4 = vadd.f32 %v2056_v38, %v2038_v50  ;;  %v2078_v13 = vadd.f32 %v2077_v52, %v2039_v21  ;;  %v4259_v19 = vsel %vm1927_vm2, 1.0, %v3016_v10  ;;  %vm2276_vm8 = vcmask 1040384  }
 0x8d3   : > { %vm1928_vm3 = vcmp.eq.s32.totalorder %v1889_v35, %v4063_v18  ;;  %vm1929_vm4 = vcmp.eq.s32.totalorder %v1889_v35, %v4068_v3  ;;  %vm2283_vm9 = vcmask 0   ;;  %vm2294_vm10 = vcmask 8200  }
 0x923   : > { %v2119_v39 = vpop.permute.xlu1 %2118  ;;  %v2109_v2 = vpop.permute.xlu0 %2108 }
 0x924   : > { %v2186_v33 = vmul.f32 %v4092_v0, %v2109_v2  ;;  %v2187_v56 = vmul.f32 %v4095_v61, %v2109_v2  ;;  %v2190_v9 = vmul.f32 %v4086_v25, %v2119_v39  ;;  %v2191_v53 = vmul.f32 %v4089_v57, %v2119_v39 }
 0x925   : > { %v2042_v0 = vmul.f32 %v4256_v6, %v3871_v63  ;;  %v2058_v61 = vadd.f32 %v2057_v4, %v2040_v24  ;;  %v4278_v57 = vsel %vm1928_vm3, 1.0, %v3016_v10  ;;  %v4283_v63 = vsel %vm1929_vm4, 1.0, %v3016_v10 }
 0x926   : > { %v2045_v18 = vmul.f32 %v4283_v63, %v3974_v43 }
 0x927   : > { %v2124_v27 = vpop.permute.xlu1 %2123  ;;  %v2114_v54 = vpop.permute.xlu0 %2113 }
 0x928   : > { %v2188_v1 = vmul.f32 %v4079_v22, %v2114_v54  ;;  %v2189_v7 = vmul.f32 %v4082_v37, %v2114_v54  ;;  %v2043_v22 = vmul.f32 %v4259_v19, %v3968_v11  ;;  %v2079_v37 = vadd.f32 %v2078_v13, %v2041_v51 }
 0x929   : > { %v2192_v2 = vmul.f32 %v4115_v32, %v2124_v27  ;;  %v2193_v38 = vmul.f32 %v4118_v15, %v2124_v27  ;;  %v2044_v27 = vmul.f32 %v4278_v57, %v3875_v16  ;;  %v2059_v54 = vadd.f32 %v2058_v61, %v2042_v0 }
 0x92a   : > { %v2218_v12 = vadd.f32 %v2188_v1, %v2186_v33  ;;  %v2239_v55 = vadd.f32 %v2189_v7, %v2187_v56  ;;  %v2080_v4 = vadd.f32 %v2079_v37, %v2043_v22  ;;  %v3017_v33 = vmov 1966171168  }
 0x92b   : > { %v2134_v50 = vpop.permute.xlu1 %2133  ;;  %v2129_v21 = vpop.permute.xlu0 %2128 }
 0x92c   : > { %v2219_v52 = vadd.f32 %v2218_v12, %v2190_v9  ;;  %v2240_v25 = vadd.f32 %v2239_v55, %v2191_v53  ;;  %v2194_v11 = vmul.f32 %v4126_v5, %v2129_v21  ;;  %v2195_v39 = vmul.f32 %v4129_v14, %v2129_v21 }
 0x92d   : > { %v2196_v3 = vmul.f32 %v4141_v44, %v2134_v50  ;;  %v2197_v35 = vmul.f32 %v4144_v29, %v2134_v50  ;;  %v1997_v14 = vunpack.c.l.s4 %v3017_v33  ;;  %v2060_v12 = vadd.f32 %v2059_v54, %v2044_v27 }
 0x92e   : > { %v2220_v24 = vadd.f32 %v2219_v52, %v2192_v2  ;;  %v2241_v32 = vadd.f32 %v2240_v25, %v2193_v38  ;;  %v2081_v43 = vadd.f32 %v2080_v4, %v2045_v18 }
 0x92f   : > { %v2144_v51 = vpop.permute.xlu1 %2143  ;;  %v2139_v15 = vpop.permute.xlu0 %2138  ;;  %v1998_v50 = vunpack.c.0.s8 %v1997_v14  ;;  %v2061_v2 = vrot.slane %v2060_v12, 4 }
 0x930   : > { %v2221_v13 = vadd.f32 %v2220_v24, %v2194_v11  ;;  %v2242_v5 = vadd.f32 %v2241_v32, %v2195_v39  ;;  %v2198_v56 = vmul.f32 %v4152_v42, %v2139_v15  ;;  %v2199_v1 = vmul.f32 %v4155_v40, %v2139_v15 }
 0x931   : > { %v2200_v55 = vmul.f32 %v4167_v49, %v2144_v51  ;;  %v2201_v44 = vmul.f32 %v4170_v48, %v2144_v51  ;;  %v2082_v38 = vrot.slane %v2081_v43, 4  ;;  %v1995_v48 = vcombine.low %v3221_v20, %v3226_v23 }
 0x932   : > { %v2222_v7 = vadd.f32 %v2221_v13, %v2196_v3  ;;  %v2243_v9 = vadd.f32 %v2242_v5, %v2197_v35  ;;  %v2001_v39 = vsub.s32 %v1998_v50, %v4047_v30  ;;  %v2062_v27 = vadd.f32 %v2061_v2, %v2060_v12 }
 0x933   : > { %v2154_v16 = vpop.permute.xlu1 %2153  ;;  %v2149_v53 = vpop.permute.xlu0 %2148  ;;  %v2083_v18 = vadd.f32 %v2082_v38, %v2081_v43 }
 0x934   : > { %v2223_v21 = vadd.f32 %v2222_v7, %v2198_v56  ;;  %v2244_v29 = vadd.f32 %v2243_v9, %v2199_v1  ;;  %v2202_v0 = vmul.f32 %v4178_v34, %v2149_v53  ;;  %v2203_v22 = vmul.f32 %v4181_v17, %v2149_v53 }
 0x935   : > { %v2204_v52 = vmul.f32 %v4193_v36, %v2154_v16  ;;  %v2205_v25 = vmul.f32 %v4196_v59, %v2154_v16  ;;  %v2002_v3 = vrot.slane %v1995_v48, %v2001_v39  ;;  %v2063_v13 = vrot.slane %v2062_v27, 2 }
 0x936   : > { %v2224_v42 = vadd.f32 %v2223_v21, %v2200_v55  ;;  %v2245_v61 = vadd.f32 %v2244_v29, %v2201_v44  ;;  %v2084_v5 = vrot.slane %v2083_v18, 2 }
 0x937   : > { %v2164_v40 = vpop.permute.xlu1 %2163  ;;  %v2159_v37 = vpop.permute.xlu0 %2158 }
 0x938   : > { %v2225_v49 = vadd.f32 %v2224_v42, %v2202_v0  ;;  %v2246_v11 = vadd.f32 %v2245_v61, %v2203_v22  ;;  %v2206_v34 = vmul.f32 %v4204_v31, %v2159_v37  ;;  %v2207_v17 = vmul.f32 %v4207_v58, %v2159_v37 }
 0x939   : > { %v2208_v36 = vmul.f32 %v4219_v47, %v2164_v40  ;;  %v2209_v59 = vmul.f32 %v4222_v41, %v2164_v40  ;;  %v2009_v41 = vrot.slane %v2002_v3, %v2001_v39  ;;  %v2085_v53 = vadd.f32 %v2084_v5, %v2083_v18 }
 0x93a   : > { %v2226_v24 = vadd.f32 %v2225_v49, %v2204_v52  ;;  %v2247_v32 = vadd.f32 %v2246_v11, %v2205_v25 }
 0x93b   : > { %v2174_v51 = vpop.permute.xlu1 %2173  ;;  %v2169_v15 = vpop.permute.xlu0 %2168  ;;  %vm2010_vm6 = vcmp.ne.s32.totalorder %v2009_v41, 0 }
 0x93c   : > { %v2227_v54 = vadd.f32 %v2226_v24, %v2206_v34  ;;  %v2248_v4 = vadd.f32 %v2247_v32, %v2207_v17  ;;  %v2210_v20 = vmul.f32 %v4230_v28, %v2169_v15  ;;  %v2211_v23 = vmul.f32 %v4233_v62, %v2169_v15  ;;  %vm2011_vm7 = vmand %vm1994_vm5, %vm2010_vm6 }
 0x93d   : > { %v2212_v33 = vmul.f32 %v4245_v46, %v2174_v51  ;;  %v2213_v14 = vmul.f32 %v4248_v8, %v2174_v51  ;;  %v2064_v62 = vadd.f32 %v2063_v13, %v2062_v27  ;;  %v2540_v22 = vsel %vm2011_vm7, 1.0, %v3016_v10 }
 0x93e   : > { %v2228_v31 = vadd.f32 %v2227_v54, %v2208_v36  ;;  %v2249_v35 = vadd.f32 %v2248_v4, %v2209_v59  ;;  %v2267_v45 = vrot.slane %v2540_v22, %v1892_v60  ;;  %v2271_v2 = vrot.slane %v2540_v22, %v1896_v26  ;;  %v2260_v26 = vld [vmem:[#allocation7] sm:$0x1] }
 0x93f   : > { %v2179_v58 = vpop.permute.xlu0 %2178  ;;  %v2184_v1 = vpop.permute.xlu1 %2183 }
 0x940   : > { %v2229_v56 = vadd.f32 %v2228_v31, %v2210_v20  ;;  %v2250_v47 = vadd.f32 %v2249_v35, %v2211_v23  ;;  %v2214_v7 = vmul.f32 %v4256_v6, %v2179_v58  ;;  %v2215_v9 = vmul.f32 %v4259_v19, %v2179_v58 }
 0x941   : > { %v2216_v12 = vmul.f32 %v4278_v57, %v2184_v1  ;;  %v2217_v43 = vmul.f32 %v4283_v63, %v2184_v1  ;;  %v2065_v6 = vrot.slane %v2064_v62, 1  ;;  %v2086_v19 = vrot.slane %v2085_v53, 1 }
 0x942   : > { %v2230_v28 = vadd.f32 %v2229_v56, %v2212_v33  ;;  %v2251_v16 = vadd.f32 %v2250_v47, %v2213_v14 }
 0x943   : > { %v2066_v61 = vadd.f32 %v2065_v6, %v2064_v62  ;;  %v2087_v63 = vadd.f32 %v2086_v19, %v2085_v53 }
 0x944   : > { %v2231_v55 = vadd.f32 %v2230_v28, %v2214_v7  ;;  %v2252_v46 = vadd.f32 %v2251_v16, %v2215_v9 }
 0x945   : > { %v2088_v25 = vsub.f32 0.0, %v2066_v61  ;;  %v2089_v49 = vsub.f32 0.0, %v2087_v63 }
 0x946   : > { %v2232_v8 = vadd.f32 %v2231_v55, %v2216_v12  ;;  %v2253_v44 = vadd.f32 %v2252_v46, %v2217_v43 }
 0x948   : > { %v2233_v21 = vrot.slane %v2232_v8, 4  ;;  %v2254_v29 = vrot.slane %v2253_v44, 4 }
 0x94a   : > { %v2234_v50 = vadd.f32 %v2233_v21, %v2232_v8  ;;  %v2255_v0 = vadd.f32 %v2254_v29, %v2253_v44 }
 0x94c   : > { %v2235_v42 = vrot.slane %v2234_v50, 2  ;;  %v2256_v57 = vrot.slane %v2255_v0, 2 }
 0x94e   : > { %v2236_v40 = vadd.f32 %v2235_v42, %v2234_v50  ;;  %v2257_v37 = vadd.f32 %v2256_v57, %v2255_v0 }
 0x950   : > { %v2237_v38 = vrot.slane %v2236_v40, 1  ;;  %v2258_v52 = vrot.slane %v2257_v37, 1 }
 0x952   : > { %v2238_v11 = vadd.f32 %v2237_v38, %v2236_v40  ;;  %v2259_v48 = vadd.f32 %v2258_v52, %v2257_v37 }
 0x954   : > { %v2286_v10 = vmul.f32 %v2267_v45, %v2238_v11  ;;  %v2287_v39 = vmul.f32 %v2271_v2, %v2259_v48  ;;  %v2261_v34 = vmul.f32 %v2238_v11, %v2088_v25  ;;  %v2262_v17 = vmul.f32 %v2259_v48, %v2089_v49 }
 0x956   : > { %v2288_v24 = vsel %vm2276_vm8, %v2286_v10, 0.0  ;;  %v2289_v32 = vsel %vm2276_vm8, %v2287_v39, 0.0  ;;  %v2274_v51 = vmul.f32 %v2267_v45, %v2261_v34  ;;  %v2275_v15 = vmul.f32 %v2271_v2, %v2262_v17 }
 0x957   : > { %v2290_v27 = vadd.f32 %v2289_v32, %v2288_v24 }
 0x958   : > { %v2277_v60 = vsel %vm2276_vm8, %v2274_v51, 0.0  ;;  %v2278_v18 = vsel %vm2276_vm8, %v2275_v15, 0.0 }
 0x959   : > { %2291 = vadd.xlane.f32.xlu1 %v2290_v27  ;;  %v2279_v30 = vadd.f32 %v2278_v18, %v2277_v60 }
 0x95b   : > { %2280 = vadd.xlane.f32.xlu0 %v2279_v30 }
 0x9e6   : > { %v2292_v54 = vpop.xlane.xlu1 %2291 }
 0x9e8   : > { %v2281_v36 = vpop.xlane.xlu0 %2280 }
 0x9e9   : > { %v2282_v59 = vadd.f32 %v2281_v36, %v2260_v26 }
 0x9eb   : > { %2284 = vst.msk [vmem:[#allocation7] sm:$0x1] %vm2283_vm9, %v2282_v59 }
 0x9f2   : > { %v2285_v4 = vld [vmem:[#allocation7] sm:$0x1] }
 0x9f3   : > { %v2293_v3 = vadd.f32 %v2292_v54, %v2285_v4 }
 0x9f5   : > { %2295 = vst.msk [vmem:[#allocation7] sm:$0x1] %vm2294_vm10, %v2293_v3 }
 0x9f6 PF: > { %s4484_s12 = sadd.s32 4294967295, %s3003_s24   ;;  %s4330_s20 = scalar_lea.hbm %s4460_s10, %s3191_s22 }
 0x9f7   : > { %s4324_s27 = sand.u32 1, %s4484_s12   ;;  %s2331_s26 = sshll.u32 %s3185_s15, 4  ;;  %s4333_s26 = int_to_ptr.vmem [resolvable:$true] %s2331_s26 }
 0x9f8   : > { %s4339_s28 = scalar_lea.hbm %s4459_s9, %s3191_s22  ;;  %s2302_s14 = scalar_lea.sflag [#allocation6], %s4324_s27 }
 0x9f9   : > { %s2847_s0 = scalar_lea.vmem %s4333_s26, 1024  ;;  %s3018_s29 = smov [#allocation5]  }
 0x9fa   : > { %p2848_p11 = scmp.ne.s32.totalorder %s4333_s26, %s2847_s0  ;;  %s2851_s12 = sshll.u32 %s3018_s29, 4  ;;  %s2852_s12 = int_to_ptr.vmem [resolvable:$false] %s2851_s12 }
 0x9fb   : > { %s2853_s15 = scalar_lea.vmem %s2852_s12, 2048  ;;  %p2854_p0 = scmp.lt.s32.totalorder %s4333_s26, %s2852_s12 }
 0x9fc   : > { %p2849_p12 = pnand %p2848_p11, %p3144_p3  ;;  %p2855_p1 = scmp.lt.s32.totalorder %s2853_s15, %s2847_s0 }
 0x9fe   : > { %p2850_p13 = pneg %p2849_p12  ;;  %p2856_p4 = por %p2855_p1, %p2854_p0 }
 0xa00   : > { %p2857_p5 = pnand %p2856_p4, %p2850_p13 }
 0xa02   : > { %2860 = shalt.err (!%p2857_p5)
}
 0xa03   : > { %s2861_s22 = scalar_lea.hbm %s4330_s20, 1024  ;;  %s2865_s21 = scalar_lea.hbm %s4460_s10, 2048 }
 0xa04   : > { %p2862_p6 = scmp.ne.s32.totalorder %s4330_s20, %s2861_s22  ;;  %p2866_p10 = scmp.lt.u32.totalorder %s4330_s20, %s4460_s10 }
 0xa05   : > { %p2867_p11 = scmp.lt.u32.totalorder %s2865_s21, %s2861_s22  ;;  %p2869_p13 = scmp.lt.u32.totalorder %s2861_s22, %s4330_s20 }
 0xa06   : > { %p2863_p7 = pnand %p2862_p6, %p3144_p3 }
 0xa07   : > { %p2868_p12 = por %p2867_p11, %p2866_p10 }
 0xa08   : > { %p2864_p9 = pneg %p2863_p7 }
 0xa09   : > { %p2870_p0 = por %p2869_p13, %p2868_p12 }
 0xa0b   : > { %p2871_p1 = pnand %p2870_p0, %p2864_p9 }
 0xa0d   : > { %2874 = shalt.err (!%p2871_p1)
}
 0xa0e   : > { %s3019_s0 = smov 256   ;;  %s3020_s12 = smov 512  }
 0xa0f   : > { %s3021_s15 = smov 16   ;;  %s2315_s22 = sshll.u32 %s3183_s18, 4  ;;  %s4369_s22 = int_to_ptr.vmem [resolvable:$true] %s2315_s22 }
 0xa10   : > { %2560 = dma.vmem_to_hbm [thread:$0]  (%p3144_p3), %s4333_s26, 1024, %s4330_s20, %s2302_s14, %s3019_s0, %s3020_s12, %s3021_s15  }
 0xa11   : > { %s2297_s19 = scalar_lea.sflag [#allocation4], %s3164_s16  ;;  %s2875_s25 = scalar_lea.vmem %s4369_s22, 4096 }
 0xa12   : > { %p2876_p4 = scmp.ne.s32.totalorder %s4369_s22, %s2875_s25  ;;  %s3022_s21 = smov [#allocation3]  }
 0xa13   : > { %s2879_s23 = sshll.u32 %s3022_s21, 4  ;;  %s2880_s23 = int_to_ptr.vmem [resolvable:$false] %s2879_s23 }
 0xa14   : > { %p2877_p5 = pnand %p2876_p4, %p3144_p3  ;;  %s2881_s29 = scalar_lea.vmem %s2880_s23, 8192 }
 0xa15   : > { %p2882_p7 = scmp.lt.s32.totalorder %s4369_s22, %s2880_s23  ;;  %p2883_p9 = scmp.lt.s32.totalorder %s2881_s29, %s2875_s25 }
 0xa16   : > { %p2878_p6 = pneg %p2877_p5 }
 0xa17   : > { %p2884_p10 = por %p2883_p9, %p2882_p7 }
 0xa19   : > { %p2885_p11 = pnand %p2884_p10, %p2878_p6 }
 0xa1b   : > { %2888 = shalt.err (!%p2885_p11)
}
 0xa1c   : > { %s2889_s18 = scalar_lea.hbm %s4339_s28, 4096  ;;  %s2893_s26 = scalar_lea.hbm %s4459_s9, 8192 }
 0xa1d   : > { %p2890_p12 = scmp.ne.s32.totalorder %s4339_s28, %s2889_s18  ;;  %p2894_p1 = scmp.lt.u32.totalorder %s4339_s28, %s4459_s9 }
 0xa1e   : > { %p2895_p4 = scmp.lt.u32.totalorder %s2893_s26, %s2889_s18  ;;  %p2897_p6 = scmp.lt.u32.totalorder %s2889_s18, %s4339_s28 }
 0xa1f   : > { %p2891_p13 = pnand %p2890_p12, %p3144_p3 }
 0xa20   : > { %p2896_p5 = por %p2895_p4, %p2894_p1 }
 0xa21   : > { %p2892_p0 = pneg %p2891_p13 }
 0xa22   : > { %p2898_p7 = por %p2897_p6, %p2896_p5 }
 0xa24   : > { %p2899_p9 = pnand %p2898_p7, %p2892_p0 }
 0xa26   : > { %2902 = shalt.err (!%p2899_p9)
}
 0xa27   : > { %2559 = dma.vmem_to_hbm [thread:$0]  (%p3144_p3), %s4369_s22, 4096, %s4339_s28, %s2297_s19, %s3019_s0, %s3020_s12, %s3021_s15  }
 0xa28   : > { %s3023_s25 = smov [#allocation7]  }
 0xa29   : > { %s2345_s23 = sshll.u32 %s3023_s25, 4  ;;  %s2346_s23 = int_to_ptr.vmem [resolvable:$true] %s2345_s23 }
 0xa2a   : > { %s2903_s29 = scalar_lea.vmem %s2346_s23, 16  ;;  %s2909_s18 = scalar_lea.vmem %s2346_s23, 32 }
 0xa2b   : > { %p2904_p10 = scmp.ne.s32.totalorder %s2346_s23, %s2903_s29  ;;  %p2910_p13 = scmp.lt.s32.totalorder %s2346_s23, %s2346_s23 }
 0xa2c   : > { %p2911_p0 = scmp.lt.s32.totalorder %s2909_s18, %s2903_s29 }
 0xa2d   : > { %p2905_p11 = pnand %p2904_p10, %p3133_p2 }
 0xa2e   : > { %p2912_p1 = por %p2911_p0, %p2910_p13 }
 0xa2f   : > { %p2906_p12 = pneg %p2905_p11 }
 0xa31   : > { %p2913_p4 = pnand %p2912_p1, %p2906_p12 }
 0xa33   : > { %2916 = shalt.err (!%p2913_p4)
}
 0xa34   : > { %s2917_s27 = scalar_lea.hbm %s4461_s11, 16 }
 0xa35   : > { %p2918_p3 = scmp.ne.s32.totalorder %s4461_s11, %s2917_s27  ;;  %p2923_p7 = scmp.lt.u32.totalorder %s2917_s27, %s4461_s11 }
 0xa37   : > { %p2919_p5 = pnand %p2918_p3, %p3133_p2 }
 0xa39   : > { %p2920_p6 = pneg %p2919_p5 }
 0xa3b   : > { %p2925_p9 = pnand %p2923_p7, %p2920_p6 }
 0xa3d   : > { %2928 = shalt.err (!%p2925_p9)
}
 0xa3e   : > { %2562 = dma.vmem_to_hbm [thread:$0]  (%p3133_p2), %s2346_s23, 16, %s4461_s11, [#allocation6]  }
 0xa3f   : > { %2962 = dma.done.wait (%p3133_p2), [#allocation6], 16  }
 0xa40   : > { %2964 = vsyncadd (%p3133_p2), [#allocation6], 4294967280 }
 0xa41 PF: > { %p2576_p10 = scmp.ge.s32.totalorder %s3003_s24, 2  ;;  %s2361_s26 = sand.u32 1, %s2975_s17  }
 0xa42   : > { %s2362_s14 = scalar_lea.sflag [#allocation4], %s2361_s26 }
 0xa43   : > { %p2568_p11 = pnand %p2576_p10, %p3157_p8 }
 0xa45   : > { %2966 = dma.done.wait (!%p2568_p11), %s2362_s14, 4096  }
 0xa46   : > { %2968 = vsyncadd (!%p2568_p11), %s2362_s14, 4294963200  ;;  %s4486_s21 = sadd.s32 4294967294, %s3003_s24  }
 0xa47   : > { %s2370_s25 = sand.u32 1, %s4486_s21  }
 0xa48   : > { %s2371_s23 = scalar_lea.sflag [#allocation6], %s2370_s25 }
 0xa49   : > { %2970 = dma.done.wait (!%p2568_p11), %s2371_s23, 1024  }
 0xa4a   : > { %2972 = vsyncadd (!%p2568_p11), %s2371_s23, 4294966272  ;;  %s28_s24 = sadd.s32 1, %s3003_s24   ;;  %s4487_s17 = sld [smem:[#allocation11_spill]] }
 0xa4b   : > { %p25_p2 = scmp.ge.s32.totalorder %s28_s24, 10   ;;  %s4488_s18 = sld [smem:[#allocation12_spill]] }
 0xa4c   : > { %s4489_s19 = sld [smem:[#allocation17_spill]]  ;;  %s4490_s20 = sld [smem:[#allocation13_spill]] }
 0xa4d   : > { %s4491_s21 = sld [smem:[#allocation14_spill]]  ;;  %s4492_s22 = sld [smem:[#allocation15_spill]] }
 0xa4e   : > { %s4493_s23 = sld [smem:[#allocation16_spill]]  ;;  %27 = sbr.rel (!%p25_p2) target bundleno = 9 (0x9), region = 143 }
 0xa55   :  { %2376 = vsyncpa [#allocation4], 1 }
 0xa56   :  { %2378 = vsyncpa [#allocation4 + $0x1], 1 }
 0xa57   :  { %2379 = vsyncpa [#allocation6], 1 }
 0xa58   :  { %2381 = vsyncpa [#allocation6 + $0x1], 1 }

</bundles_post_ra>
